<compile_context>
chip_gen: v7x
topology: tpu7x:2x2x1
jax: 0.10.0
libtpu: 0.0.40
codegen_flags: <defaults>
</compile_context>

<pallas_src>
import math
import functools

import jax
import jax.numpy as jnp
from jax import lax
from jax.experimental import pallas as pl
from jax.experimental.pallas import tpu as pltpu


# ----------------------------- config ---------------------------------------
class Config:
    vocab_size = 128
    hidden_size = 32
    num_attention_heads = 4
    num_hidden_layers = 2
    intermediate_size = 64
    max_position_embeddings = 64
    type_vocab_size = 2
    pad_token_id = 0
    layer_norm_eps = 1e-12


# ----------------------------- kernel helpers --------------------------------
def _layernorm(x, gamma, beta, eps):
    # PyTorch LayerNorm semantics: biased variance over last dim, f32 stats.
    mean = jnp.mean(x, axis=-1, keepdims=True)
    var = jnp.mean((x - mean) ** 2, axis=-1, keepdims=True)
    return (x - mean) * lax.rsqrt(var + eps) * gamma + beta


def _gelu_exact(x):
    # exact (erf-based) GELU, matching torch.nn.GELU() default
    return 0.5 * x * (1.0 + lax.erf(x * (1.0 / math.sqrt(2.0))))


# ----------------------------- fused kernel ----------------------------------
def _bert_fused_kernel(emb_ref, pos_ref, eg_ref, eb_ref, mask_ref,
                       qkv_w_ref, qkv_b_ref,
                       ao_w_ref, ao_b_ref, ao_g_ref, ao_beta_ref,
                       i_w_ref, i_b_ref,
                       o_w_ref, o_b_ref, o_g_ref, o_beta_ref,
                       pool_w_ref, pool_b_ref,
                       enc_out_ref, pool_out_ref,
                       h_ref, *, nh, dh, scale, eps):
    """One (batch, layer) grid step of the fully fused BERT forward."""
    l = pl.program_id(1)
    n_layers = pl.num_programs(1)
    H = nh * dh

    # ---- l == 0: embeddings sum + LayerNorm into the resident hidden state ----
    @pl.when(l == 0)
    def _():
        x0 = emb_ref[0].astype(jnp.float32) + pos_ref[...].astype(jnp.float32)
        h_ref[...] = _layernorm(x0, eg_ref[...], eb_ref[...], eps)
        # TODO(synk): embedding hidden-dropout omitted (eval-mode identity)

    x = h_ref[...]                                                   # (S, H) f32

    # ---- fused Q/K/V projection: (S, 3H) ----
    qkv = jnp.dot(x, qkv_w_ref[0], preferred_element_type=jnp.float32)
    qkv = qkv + qkv_b_ref[0]

    # ---- multi-head attention ----
    # Per-head scores stay small 2-D MXU dots; softmax is batched once over
    # the stacked (nh, S, S) scores (single mask add / max / exp / sum / recip).
    scores = []
    for h in range(nh):
        q_h = qkv[:, h * dh:(h + 1) * dh]                            # (S, dh)
        k_h = qkv[:, H + h * dh: H + (h + 1) * dh]                   # (S, dh)
        s_h = jnp.dot(q_h, k_h.T, preferred_element_type=jnp.float32) * scale
        scores.append(s_h[None])                                     # (1, S, S)
    s = jnp.concatenate(scores, axis=0)                              # (nh, S, S)
    s = s + mask_ref[...]                                            # (1,1,S) bcast
    s = s - jnp.max(s, axis=-1, keepdims=True)
    p = jnp.exp(s)
    p = p * pl.reciprocal(jnp.sum(p, axis=-1, keepdims=True), approx=True)
    # TODO(synk): attention-probs dropout omitted (eval-mode identity)

    # head->hidden recombination fused into the output projection:
    #   ctx @ W_o == sum_h ctx_h @ W_o[h*dh:(h+1)*dh, :]
    ao_w = ao_w_ref[0]                                               # (H, H)
    attn = ao_b_ref[0].astype(jnp.float32)                           # (1, H) bcast
    for h in range(nh):
        v_h = qkv[:, 2 * H + h * dh: 2 * H + (h + 1) * dh]           # (S, dh)
        ctx_h = jnp.dot(p[h], v_h, preferred_element_type=jnp.float32)
        attn = attn + jnp.dot(ctx_h, ao_w[h * dh:(h + 1) * dh, :],
                              preferred_element_type=jnp.float32)

    # residual + LayerNorm (attention output)
    attn_out = _layernorm(attn + x, ao_g_ref[0], ao_beta_ref[0], eps)

    # ---- FFN ----
    inter = jnp.dot(attn_out, i_w_ref[0], preferred_element_type=jnp.float32)
    inter = _gelu_exact(inter + i_b_ref[0])
    ffn = jnp.dot(inter, o_w_ref[0], preferred_element_type=jnp.float32)
    ffn = ffn + o_b_ref[0]

    # residual + LayerNorm (layer output), keep resident in VMEM
    out = _layernorm(ffn + attn_out, o_g_ref[0], o_beta_ref[0], eps)
    h_ref[...] = out

    # ---- l == L-1: write encoder output once + fused pooler epilogue ----
    @pl.when(l == n_layers - 1)
    def _():
        enc_out_ref[0] = out.astype(enc_out_ref.dtype)
        first = out[0:1, :]                                          # (1, H)
        pooled = jnp.tanh(jnp.dot(first, pool_w_ref[...],
                                  preferred_element_type=jnp.float32)
                          + pool_b_ref[...])
        pool_out_ref[0] = pooled.astype(pool_out_ref.dtype)


# ----------------------------- wrapper ----------------------------------------
def bert_fused(emb_wt, pos_s, emb_g, emb_b, ext_mask,
               qkv_w, qkv_b, ao_w, ao_b, ao_g, ao_beta,
               i_w, i_b, o_w, o_b, o_g, o_beta,
               pool_w, pool_b, *, nh, dh, eps):
    B, S, H = emb_wt.shape
    L = qkv_w.shape[0]
    I = i_w.shape[-1]
    scale = 1.0 / math.sqrt(dh)
    kern = functools.partial(_bert_fused_kernel, nh=nh, dh=dh, scale=scale, eps=eps)

    def per_batch(shape):
        return pl.BlockSpec(shape, lambda b, l: (b,) + (0,) * (len(shape) - 1))

    def per_layer(shape):
        return pl.BlockSpec(shape, lambda b, l: (l,) + (0,) * (len(shape) - 1))

    def const(shape):
        return pl.BlockSpec(shape, lambda b, l: (0,) * len(shape))

    # Advisory cost estimate so XLA schedules around the single custom call.
    flops_layer = (2 * S * H * 3 * H          # QKV proj
                   + 4 * S * S * H            # scores + context
                   + 2 * S * H * H            # attn output proj
                   + 4 * S * H * I)           # FFN (two matmuls)
    flops = B * L * flops_layer + B * 2 * H * H
    transcendentals = B * L * (nh * S * S + S * I) + B * H
    weight_bytes_layer = 4 * (3 * H * H + H * H + 2 * H * I + 8 * H + I)
    bytes_accessed = (B * L * weight_bytes_layer
                      + 4 * (2 * B * S * H + B * S + S * H + B * H + 2 * H * H))
    cost = pl.CostEstimate(flops=flops, transcendentals=transcendentals,
                           bytes_accessed=bytes_accessed)

    enc_out, pooled = pl.pallas_call(
        kern,
        out_shape=(jax.ShapeDtypeStruct((B, S, H), emb_wt.dtype),
                   jax.ShapeDtypeStruct((B, 1, H), emb_wt.dtype)),
        grid=(B, L),
        in_specs=[
            per_batch((1, S, H)),        # word+type embedding sum
            const((S, H)),               # position embeddings (broadcast in-kernel)
            const((1, H)), const((1, H)),          # embedding LN gamma/beta
            per_batch((1, 1, S)),        # additive attention mask
            per_layer((1, H, 3 * H)), per_layer((1, 1, 3 * H)),      # fused QKV
            per_layer((1, H, H)),                                    # attn out W
            per_layer((1, 1, H)), per_layer((1, 1, H)), per_layer((1, 1, H)),
            per_layer((1, H, I)), per_layer((1, 1, I)),              # intermediate
            per_layer((1, I, H)),                                    # FFN output W
            per_layer((1, 1, H)), per_layer((1, 1, H)), per_layer((1, 1, H)),
            const((H, H)), const((1, H)),                            # pooler
        ],
        out_specs=(per_batch((1, S, H)),
                   per_batch((1, 1, H))),
        scratch_shapes=[pltpu.VMEM((S, H), jnp.float32)],   # resident hidden state
        compiler_params=pltpu.CompilerParams(
            dimension_semantics=("parallel", "arbitrary"),
            vmem_limit_bytes=32 * 1024 * 1024),
        cost_estimate=cost,
    )(emb_wt, pos_s, emb_g, emb_b, ext_mask,
      qkv_w, qkv_b, ao_w, ao_b, ao_g, ao_beta,
      i_w, i_b, o_w, o_b, o_g, o_beta,
      pool_w, pool_b)
    return enc_out, pooled


# ----------------------------- parameters --------------------------------------
def init_params(key, cfg):
    keys = iter(jax.random.split(key, 64))

    def nrm(shape):
        return jax.random.normal(next(keys), shape, jnp.float32) * 0.02

    H, I = cfg.hidden_size, cfg.intermediate_size
    params = {
        "word_emb": nrm((cfg.vocab_size, H)).at[cfg.pad_token_id].set(0.0),
        "pos_emb": nrm((cfg.max_position_embeddings, H)),
        "type_emb": nrm((cfg.type_vocab_size, H)),
        "emb_ln_g": jnp.ones((H,), jnp.float32),
        "emb_ln_b": jnp.zeros((H,), jnp.float32),
        "pool_w": nrm((H, H)),
        "pool_b": jnp.zeros((H,), jnp.float32),
        "layers": [],
    }
    for _ in range(cfg.num_hidden_layers):
        params["layers"].append({
            "q_w": nrm((H, H)), "q_b": jnp.zeros((H,), jnp.float32),
            "k_w": nrm((H, H)), "k_b": jnp.zeros((H,), jnp.float32),
            "v_w": nrm((H, H)), "v_b": jnp.zeros((H,), jnp.float32),
            "ao_w": nrm((H, H)), "ao_b": jnp.zeros((H,), jnp.float32),
            "ao_ln_g": jnp.ones((H,), jnp.float32), "ao_ln_b": jnp.zeros((H,), jnp.float32),
            "i_w": nrm((H, I)), "i_b": jnp.zeros((I,), jnp.float32),
            "o_w": nrm((I, H)), "o_b": jnp.zeros((H,), jnp.float32),
            "o_ln_g": jnp.ones((H,), jnp.float32), "o_ln_b": jnp.zeros((H,), jnp.float32),
        })
    return params


def pack_params(params, cfg):
    """One-time preprocessing: fuse QKV and stack per-layer weights on a leading
    L axis so the jitted forward never concatenates / restacks anything."""
    H, I = cfg.hidden_size, cfg.intermediate_size
    layers = params["layers"]

    def stack2(name, last):
        return jnp.stack([lyr[name].reshape(1, last) for lyr in layers], axis=0)

    packed = {
        "word_emb": params["word_emb"],
        "pos_emb": params["pos_emb"],
        "type_emb": params["type_emb"],
        "emb_ln_g": params["emb_ln_g"].reshape(1, H),
        "emb_ln_b": params["emb_ln_b"].reshape(1, H),
        "pool_w": params["pool_w"],
        "pool_b": params["pool_b"].reshape(1, H),
        "qkv_w": jnp.stack([jnp.concatenate([l["q_w"], l["k_w"], l["v_w"]], axis=1)
                            for l in layers], axis=0),                     # (L, H, 3H)
        "qkv_b": jnp.stack([jnp.concatenate([l["q_b"], l["k_b"], l["v_b"]]
                                            ).reshape(1, 3 * H)
                            for l in layers], axis=0),                     # (L, 1, 3H)
        "ao_w": jnp.stack([l["ao_w"] for l in layers], axis=0),            # (L, H, H)
        "ao_b": stack2("ao_b", H),
        "ao_g": stack2("ao_ln_g", H),
        "ao_beta": stack2("ao_ln_b", H),
        "i_w": jnp.stack([l["i_w"] for l in layers], axis=0),              # (L, H, I)
        "i_b": stack2("i_b", I),
        "o_w": jnp.stack([l["o_w"] for l in layers], axis=0),              # (L, I, H)
        "o_b": stack2("o_b", H),
        "o_g": stack2("o_ln_g", H),
        "o_beta": stack2("o_ln_b", H),
    }
    return packed


# ----------------------------- forward ------------------------------------------
def bert_forward(packed, input_ids, attention_mask=None, token_type_ids=None,
                 cfg=Config):
    B, S = input_ids.shape
    H = cfg.hidden_size
    NH = cfg.num_attention_heads
    DH = H // NH

    if attention_mask is None:
        attention_mask = jnp.ones_like(input_ids)
    if token_type_ids is None:
        token_type_ids = jnp.zeros_like(input_ids)

    # extended attention mask: (1 - mask) * -10000, broadcast over (head, query)
    ext_mask = ((1.0 - attention_mask.astype(jnp.float32)) * -10000.0
                ).reshape(B, 1, S)

    # TODO(synk): embedding-table gathers stay in JAX (data-dependent gather);
    # their sum + LayerNorm is fused into the kernel's l == 0 step.
    emb_wt = (jnp.take(packed["word_emb"], input_ids, axis=0)
              + jnp.take(packed["type_emb"], token_type_ids, axis=0))      # (B, S, H)
    pos_s = packed["pos_emb"][:S]                                          # (S, H)

    enc_out, pooled = bert_fused(
        emb_wt, pos_s, packed["emb_ln_g"], packed["emb_ln_b"], ext_mask,
        packed["qkv_w"], packed["qkv_b"],
        packed["ao_w"], packed["ao_b"], packed["ao_g"], packed["ao_beta"],
        packed["i_w"], packed["i_b"],
        packed["o_w"], packed["o_b"], packed["o_g"], packed["o_beta"],
        packed["pool_w"], packed["pool_b"],
        nh=NH, dh=DH, eps=cfg.layer_norm_eps)

    return enc_out, pooled.reshape(B, H)


# ----------------------------- main ---------------------------------------------
if __name__ == "__main__":
    cfg = Config()
    key = jax.random.PRNGKey(0)
    k_param, k_ids = jax.random.split(key)

    params = init_params(k_param, cfg)
    packed = pack_params(params, cfg)   # one-time weight packing (hoisted out of jit)

    B, S = 2, 8
    input_ids = jax.random.randint(k_ids, (B, S), 1, cfg.vocab_size, dtype=jnp.int32)
    attention_mask = jnp.ones((B, S), dtype=jnp.int32).at[1, 6:].set(0)
    token_type_ids = jnp.zeros((B, S), dtype=jnp.int32)

    fwd = jax.jit(lambda p, ids, am, tt: bert_forward(p, ids, am, tt, cfg))
    encoder_output, pooled_output = fwd(packed, input_ids, attention_mask,
                                        token_type_ids)

    jax.block_until_ready(encoder_output)
    jax.block_until_ready(pooled_output)
    assert encoder_output.shape == (B, S, cfg.hidden_size)
    assert pooled_output.shape == (B, cfg.hidden_size)
    assert bool(jnp.all(jnp.isfinite(encoder_output)))
    assert bool(jnp.all(jnp.isfinite(pooled_output)))
    print("KERNEL_OK")
</pallas_src>

<mosaic_0001>
module attributes {stable_mosaic.version = 11 : i64} {
  func.func @_bert_fused_kernel(%arg0: i32, %arg1: i32, %arg2: memref<1x8x32xf32, #tpu.memory_space<vmem>>, %arg3: memref<8x32xf32, #tpu.memory_space<vmem>>, %arg4: memref<1x32xf32, #tpu.memory_space<vmem>>, %arg5: memref<1x32xf32, #tpu.memory_space<vmem>>, %arg6: memref<1x1x8xf32, #tpu.memory_space<vmem>>, %arg7: memref<1x32x96xf32, #tpu.memory_space<vmem>>, %arg8: memref<1x1x96xf32, #tpu.memory_space<vmem>>, %arg9: memref<1x32x32xf32, #tpu.memory_space<vmem>>, %arg10: memref<1x1x32xf32, #tpu.memory_space<vmem>>, %arg11: memref<1x1x32xf32, #tpu.memory_space<vmem>>, %arg12: memref<1x1x32xf32, #tpu.memory_space<vmem>>, %arg13: memref<1x32x64xf32, #tpu.memory_space<vmem>>, %arg14: memref<1x1x64xf32, #tpu.memory_space<vmem>>, %arg15: memref<1x64x32xf32, #tpu.memory_space<vmem>>, %arg16: memref<1x1x32xf32, #tpu.memory_space<vmem>>, %arg17: memref<1x1x32xf32, #tpu.memory_space<vmem>>, %arg18: memref<1x1x32xf32, #tpu.memory_space<vmem>>, %arg19: memref<32x32xf32, #tpu.memory_space<vmem>>, %arg20: memref<1x32xf32, #tpu.memory_space<vmem>>, %arg21: memref<1x8x32xf32, #tpu.memory_space<vmem>>, %arg22: memref<1x1x32xf32, #tpu.memory_space<vmem>>, %arg23: memref<8x32xf32, #tpu.memory_space<vmem>>) attributes {dimension_semantics = [#tpu.dimension_semantics<parallel>, #tpu.dimension_semantics<arbitrary>], iteration_bounds = array<i64: 2, 2>, scalar_prefetch = 0 : i64, scratch_operands = 1 : i64, tpu.core_type = #tpu.core_type<tc>, window_params = [{transform_indices = @transform_0, window_bounds = array<i64: 1, 8, 32>}, {pipeline_mode = #tpu.pipeline_mode<synchronous>, transform_indices = @transform_1, window_bounds = array<i64: 8, 32>}, {pipeline_mode = #tpu.pipeline_mode<synchronous>, transform_indices = @transform_2, window_bounds = array<i64: 1, 32>}, {pipeline_mode = #tpu.pipeline_mode<synchronous>, transform_indices = @transform_3, window_bounds = array<i64: 1, 32>}, {transform_indices = @transform_4, window_bounds = array<i64: 1, 1, 8>}, {transform_indices = @transform_5, window_bounds = array<i64: 1, 32, 96>}, {transform_indices = @transform_6, window_bounds = array<i64: 1, 1, 96>}, {transform_indices = @transform_7, window_bounds = array<i64: 1, 32, 32>}, {transform_indices = @transform_8, window_bounds = array<i64: 1, 1, 32>}, {transform_indices = @transform_9, window_bounds = array<i64: 1, 1, 32>}, {transform_indices = @transform_10, window_bounds = array<i64: 1, 1, 32>}, {transform_indices = @transform_11, window_bounds = array<i64: 1, 32, 64>}, {transform_indices = @transform_12, window_bounds = array<i64: 1, 1, 64>}, {transform_indices = @transform_13, window_bounds = array<i64: 1, 64, 32>}, {transform_indices = @transform_14, window_bounds = array<i64: 1, 1, 32>}, {transform_indices = @transform_15, window_bounds = array<i64: 1, 1, 32>}, {transform_indices = @transform_16, window_bounds = array<i64: 1, 1, 32>}, {pipeline_mode = #tpu.pipeline_mode<synchronous>, transform_indices = @transform_17, window_bounds = array<i64: 32, 32>}, {pipeline_mode = #tpu.pipeline_mode<synchronous>, transform_indices = @transform_18, window_bounds = array<i64: 1, 32>}, {transform_indices = @transform_19, window_bounds = array<i64: 1, 8, 32>}, {transform_indices = @transform_20, window_bounds = array<i64: 1, 1, 32>}]} {
    %c0_i32 = arith.constant 0 : i32
    %0 = arith.cmpi eq, %arg1, %c0_i32 : i32
    %1 = arith.extui %0 : i1 to i32
    %c0_i32_0 = arith.constant 0 : i32
    %2 = arith.cmpi ne, %1, %c0_i32_0 : i32
    scf.if %2 {
      %c0_77 = arith.constant 0 : index
      %c0_78 = arith.constant 0 : index
      %c0_79 = arith.constant 0 : index
      %166 = vector.load %arg2[%c0_77, %c0_78, %c0_79] : memref<1x8x32xf32, #tpu.memory_space<vmem>>, vector<1x8x32xf32>
      %167 = vector.shape_cast %166 : vector<1x8x32xf32> to vector<8x32xf32>
      %c0_80 = arith.constant 0 : index
      %c0_81 = arith.constant 0 : index
      %168 = vector.load %arg3[%c0_80, %c0_81] : memref<8x32xf32, #tpu.memory_space<vmem>>, vector<8x32xf32>
      %169 = arith.addf %167, %168 : vector<8x32xf32>
      %c0_82 = arith.constant 0 : index
      %c0_83 = arith.constant 0 : index
      %170 = vector.load %arg4[%c0_82, %c0_83] : memref<1x32xf32, #tpu.memory_space<vmem>>, vector<1x32xf32>
      %c0_84 = arith.constant 0 : index
      %c0_85 = arith.constant 0 : index
      %171 = vector.load %arg5[%c0_84, %c0_85] : memref<1x32xf32, #tpu.memory_space<vmem>>, vector<1x32xf32>
      %cst_86 = arith.constant dense<0.000000e+00> : vector<8xf32>
      %172 = vector.multi_reduction <add>, %169, %cst_86 [1] : vector<8x32xf32> to vector<8xf32>
      %173 = vector.shape_cast %172 : vector<8xf32> to vector<8x1xf32>
      %cst_87 = arith.constant 3.200000e+01 : f32
      %174 = vector.broadcast %cst_87 : f32 to vector<8x1xf32>
      %175 = arith.divf %173, %174 : vector<8x1xf32>
      %176 = vector.broadcast %175 : vector<8x1xf32> to vector<8x32xf32>
      %177 = arith.subf %169, %176 : vector<8x32xf32>
      %178 = arith.mulf %177, %177 : vector<8x32xf32>
      %cst_88 = arith.constant dense<0.000000e+00> : vector<8xf32>
      %179 = vector.multi_reduction <add>, %178, %cst_88 [1] : vector<8x32xf32> to vector<8xf32>
      %180 = vector.shape_cast %179 : vector<8xf32> to vector<8x1xf32>
      %cst_89 = arith.constant 3.200000e+01 : f32
      %181 = vector.broadcast %cst_89 : f32 to vector<8x1xf32>
      %182 = arith.divf %180, %181 : vector<8x1xf32>
      %183 = vector.broadcast %175 : vector<8x1xf32> to vector<8x32xf32>
      %184 = arith.subf %169, %183 : vector<8x32xf32>
      %cst_90 = arith.constant 9.99999996E-13 : f32
      %185 = vector.broadcast %cst_90 : f32 to vector<8x1xf32>
      %186 = arith.addf %182, %185 : vector<8x1xf32>
      %187 = math.rsqrt %186 : vector<8x1xf32>
      %188 = vector.broadcast %187 : vector<8x1xf32> to vector<8x32xf32>
      %189 = arith.mulf %184, %188 : vector<8x32xf32>
      %190 = vector.broadcast %170 : vector<1x32xf32> to vector<8x32xf32>
      %191 = arith.mulf %189, %190 : vector<8x32xf32>
      %192 = vector.broadcast %171 : vector<1x32xf32> to vector<8x32xf32>
      %193 = arith.addf %191, %192 : vector<8x32xf32>
      %c0_91 = arith.constant 0 : index
      %c0_92 = arith.constant 0 : index
      %194 = vector.load %arg23[%c0_91, %c0_92] : memref<8x32xf32, #tpu.memory_space<vmem>>, vector<8x32xf32>
      tpu.vector_store %arg23[%c0_91, %c0_92], %193 {strides = array<i32>} : memref<8x32xf32, #tpu.memory_space<vmem>>, vector<8x32xf32>,
    } else {
    }
    %c0 = arith.constant 0 : index
    %c0_1 = arith.constant 0 : index
    %3 = vector.load %arg23[%c0, %c0_1] : memref<8x32xf32, #tpu.memory_space<vmem>>, vector<8x32xf32>
    %c0_2 = arith.constant 0 : index
    %c0_3 = arith.constant 0 : index
    %c0_4 = arith.constant 0 : index
    %4 = vector.load %arg7[%c0_2, %c0_3, %c0_4] : memref<1x32x96xf32, #tpu.memory_space<vmem>>, vector<1x32x96xf32>
    %5 = vector.shape_cast %4 : vector<1x32x96xf32> to vector<32x96xf32>
    %cst = arith.constant dense<0.000000e+00> : vector<8x96xf32>
    %6 = tpu.matmul %3, %5, %cst {dimension_numbers = #tpu.dot_dimension_numbers<[1], [0], [0], [1], [0, 0, 1, 1], [], []>} : vector<8x32xf32>, vector<32x96xf32>, vector<8x96xf32> -> vector<8x96xf32>
    %c0_5 = arith.constant 0 : index
    %c0_6 = arith.constant 0 : index
    %c0_7 = arith.constant 0 : index
    %7 = vector.load %arg8[%c0_5, %c0_6, %c0_7] : memref<1x1x96xf32, #tpu.memory_space<vmem>>, vector<1x1x96xf32>
    %8 = vector.shape_cast %7 : vector<1x1x96xf32> to vector<1x96xf32>
    %9 = vector.broadcast %8 : vector<1x96xf32> to vector<8x96xf32>
    %10 = arith.addf %6, %9 : vector<8x96xf32>
    %11 = vector.extract_strided_slice %10 {offsets = [0, 0], sizes = [8, 8], strides = [1, 1]} : vector<8x96xf32> to vector<8x8xf32>
    %12 = vector.extract_strided_slice %10 {offsets = [0, 32], sizes = [8, 8], strides = [1, 1]} : vector<8x96xf32> to vector<8x8xf32>
    %13 = tpu.transpose %12, [1, 0] : vector<8x8xf32> -> vector<8x8xf32>
    %cst_8 = arith.constant dense<0.000000e+00> : vector<8x8xf32>
    %14 = tpu.matmul %11, %13, %cst_8 {dimension_numbers = #tpu.dot_dimension_numbers<[1], [0], [0], [1], [0, 0, 1, 1], [], []>} : vector<8x8xf32>, vector<8x8xf32>, vector<8x8xf32> -> vector<8x8xf32>
    %cst_9 = arith.constant 0.353553385 : f32
    %15 = vector.broadcast %cst_9 : f32 to vector<8x8xf32>
    %16 = arith.mulf %14, %15 : vector<8x8xf32>
    %17 = vector.shape_cast %16 : vector<8x8xf32> to vector<1x8x8xf32>
    %18 = vector.extract_strided_slice %10 {offsets = [0, 8], sizes = [8, 8], strides = [1, 1]} : vector<8x96xf32> to vector<8x8xf32>
    %19 = vector.extract_strided_slice %10 {offsets = [0, 40], sizes = [8, 8], strides = [1, 1]} : vector<8x96xf32> to vector<8x8xf32>
    %20 = tpu.transpose %19, [1, 0] : vector<8x8xf32> -> vector<8x8xf32>
    %cst_10 = arith.constant dense<0.000000e+00> : vector<8x8xf32>
    %21 = tpu.matmul %18, %20, %cst_10 {dimension_numbers = #tpu.dot_dimension_numbers<[1], [0], [0], [1], [0, 0, 1, 1], [], []>} : vector<8x8xf32>, vector<8x8xf32>, vector<8x8xf32> -> vector<8x8xf32>
    %cst_11 = arith.constant 0.353553385 : f32
    %22 = vector.broadcast %cst_11 : f32 to vector<8x8xf32>
    %23 = arith.mulf %21, %22 : vector<8x8xf32>
    %24 = vector.shape_cast %23 : vector<8x8xf32> to vector<1x8x8xf32>
    %25 = vector.extract_strided_slice %10 {offsets = [0, 16], sizes = [8, 8], strides = [1, 1]} : vector<8x96xf32> to vector<8x8xf32>
    %26 = vector.extract_strided_slice %10 {offsets = [0, 48], sizes = [8, 8], strides = [1, 1]} : vector<8x96xf32> to vector<8x8xf32>
    %27 = tpu.transpose %26, [1, 0] : vector<8x8xf32> -> vector<8x8xf32>
    %cst_12 = arith.constant dense<0.000000e+00> : vector<8x8xf32>
    %28 = tpu.matmul %25, %27, %cst_12 {dimension_numbers = #tpu.dot_dimension_numbers<[1], [0], [0], [1], [0, 0, 1, 1], [], []>} : vector<8x8xf32>, vector<8x8xf32>, vector<8x8xf32> -> vector<8x8xf32>
    %cst_13 = arith.constant 0.353553385 : f32
    %29 = vector.broadcast %cst_13 : f32 to vector<8x8xf32>
    %30 = arith.mulf %28, %29 : vector<8x8xf32>
    %31 = vector.shape_cast %30 : vector<8x8xf32> to vector<1x8x8xf32>
    %32 = vector.extract_strided_slice %10 {offsets = [0, 24], sizes = [8, 8], strides = [1, 1]} : vector<8x96xf32> to vector<8x8xf32>
    %33 = vector.extract_strided_slice %10 {offsets = [0, 56], sizes = [8, 8], strides = [1, 1]} : vector<8x96xf32> to vector<8x8xf32>
    %34 = tpu.transpose %33, [1, 0] : vector<8x8xf32> -> vector<8x8xf32>
    %cst_14 = arith.constant dense<0.000000e+00> : vector<8x8xf32>
    %35 = tpu.matmul %32, %34, %cst_14 {dimension_numbers = #tpu.dot_dimension_numbers<[1], [0], [0], [1], [0, 0, 1, 1], [], []>} : vector<8x8xf32>, vector<8x8xf32>, vector<8x8xf32> -> vector<8x8xf32>
    %cst_15 = arith.constant 0.353553385 : f32
    %36 = vector.broadcast %cst_15 : f32 to vector<8x8xf32>
    %37 = arith.mulf %35, %36 : vector<8x8xf32>
    %38 = vector.shape_cast %37 : vector<8x8xf32> to vector<1x8x8xf32>
    %39 = tpu.concatenate %17, %24, %31, %38 in 0 : vector<1x8x8xf32>, vector<1x8x8xf32>, vector<1x8x8xf32>, vector<1x8x8xf32> -> vector<4x8x8xf32>
    %c0_16 = arith.constant 0 : index
    %c0_17 = arith.constant 0 : index
    %c0_18 = arith.constant 0 : index
    %40 = vector.load %arg6[%c0_16, %c0_17, %c0_18] : memref<1x1x8xf32, #tpu.memory_space<vmem>>, vector<1x1x8xf32>
    %41 = vector.broadcast %40 : vector<1x1x8xf32> to vector<4x8x8xf32>
    %42 = arith.addf %39, %41 : vector<4x8x8xf32>
    %cst_19 = arith.constant dense<0xFF800000> : vector<4x8xf32>
    %43 = vector.multi_reduction <maximumf>, %42, %cst_19 [2] : vector<4x8x8xf32> to vector<4x8xf32>
    %44 = vector.shape_cast %43 : vector<4x8xf32> to vector<4x8x1xf32>
    %45 = vector.broadcast %44 : vector<4x8x1xf32> to vector<4x8x8xf32>
    %46 = arith.subf %42, %45 : vector<4x8x8xf32>
    %47 = math.exp %46 : vector<4x8x8xf32>
    %cst_20 = arith.constant dense<0.000000e+00> : vector<4x8xf32>
    %48 = vector.multi_reduction <add>, %47, %cst_20 [2] : vector<4x8x8xf32> to vector<4x8xf32>
    %49 = vector.shape_cast %48 : vector<4x8xf32> to vector<4x8x1xf32>
    %50 = tpu.reciprocal %49 {approx = true} : vector<4x8x1xf32> -> vector<4x8x1xf32>
    %51 = vector.broadcast %50 : vector<4x8x1xf32> to vector<4x8x8xf32>
    %52 = arith.mulf %47, %51 : vector<4x8x8xf32>
    %c0_21 = arith.constant 0 : index
    %c0_22 = arith.constant 0 : index
    %c0_23 = arith.constant 0 : index
    %53 = vector.load %arg9[%c0_21, %c0_22, %c0_23] : memref<1x32x32xf32, #tpu.memory_space<vmem>>, vector<1x32x32xf32>
    %54 = vector.shape_cast %53 : vector<1x32x32xf32> to vector<32x32xf32>
    %c0_24 = arith.constant 0 : index
    %c0_25 = arith.constant 0 : index
    %c0_26 = arith.constant 0 : index
    %55 = vector.load %arg10[%c0_24, %c0_25, %c0_26] : memref<1x1x32xf32, #tpu.memory_space<vmem>>, vector<1x1x32xf32>
    %56 = vector.shape_cast %55 : vector<1x1x32xf32> to vector<1x32xf32>
    %57 = vector.extract_strided_slice %10 {offsets = [0, 64], sizes = [8, 8], strides = [1, 1]} : vector<8x96xf32> to vector<8x8xf32>
    %58 = vector.extract_strided_slice %52 {offsets = [0, 0, 0], sizes = [1, 8, 8], strides = [1, 1, 1]} : vector<4x8x8xf32> to vector<1x8x8xf32>
    %59 = vector.shape_cast %58 : vector<1x8x8xf32> to vector<8x8xf32>
    %cst_27 = arith.constant dense<0.000000e+00> : vector<8x8xf32>
    %60 = tpu.matmul %59, %57, %cst_27 {dimension_numbers = #tpu.dot_dimension_numbers<[1], [0], [0], [1], [0, 0, 1, 1], [], []>} : vector<8x8xf32>, vector<8x8xf32>, vector<8x8xf32> -> vector<8x8xf32>
    %61 = vector.extract_strided_slice %54 {offsets = [0, 0], sizes = [8, 32], strides = [1, 1]} : vector<32x32xf32> to vector<8x32xf32>
    %cst_28 = arith.constant dense<0.000000e+00> : vector<8x32xf32>
    %62 = tpu.matmul %60, %61, %cst_28 {dimension_numbers = #tpu.dot_dimension_numbers<[1], [0], [0], [1], [0, 0, 1, 1], [], []>} : vector<8x8xf32>, vector<8x32xf32>, vector<8x32xf32> -> vector<8x32xf32>
    %63 = vector.broadcast %56 : vector<1x32xf32> to vector<8x32xf32>
    %64 = arith.addf %63, %62 : vector<8x32xf32>
    %65 = vector.extract_strided_slice %10 {offsets = [0, 72], sizes = [8, 8], strides = [1, 1]} : vector<8x96xf32> to vector<8x8xf32>
    %66 = vector.extract_strided_slice %52 {offsets = [1, 0, 0], sizes = [1, 8, 8], strides = [1, 1, 1]} : vector<4x8x8xf32> to vector<1x8x8xf32>
    %67 = vector.shape_cast %66 : vector<1x8x8xf32> to vector<8x8xf32>
    %cst_29 = arith.constant dense<0.000000e+00> : vector<8x8xf32>
    %68 = tpu.matmul %67, %65, %cst_29 {dimension_numbers = #tpu.dot_dimension_numbers<[1], [0], [0], [1], [0, 0, 1, 1], [], []>} : vector<8x8xf32>, vector<8x8xf32>, vector<8x8xf32> -> vector<8x8xf32>
    %69 = vector.extract_strided_slice %54 {offsets = [8, 0], sizes = [8, 32], strides = [1, 1]} : vector<32x32xf32> to vector<8x32xf32>
    %cst_30 = arith.constant dense<0.000000e+00> : vector<8x32xf32>
    %70 = tpu.matmul %68, %69, %cst_30 {dimension_numbers = #tpu.dot_dimension_numbers<[1], [0], [0], [1], [0, 0, 1, 1], [], []>} : vector<8x8xf32>, vector<8x32xf32>, vector<8x32xf32> -> vector<8x32xf32>
    %71 = arith.addf %64, %70 : vector<8x32xf32>
    %72 = vector.extract_strided_slice %10 {offsets = [0, 80], sizes = [8, 8], strides = [1, 1]} : vector<8x96xf32> to vector<8x8xf32>
    %73 = vector.extract_strided_slice %52 {offsets = [2, 0, 0], sizes = [1, 8, 8], strides = [1, 1, 1]} : vector<4x8x8xf32> to vector<1x8x8xf32>
    %74 = vector.shape_cast %73 : vector<1x8x8xf32> to vector<8x8xf32>
    %cst_31 = arith.constant dense<0.000000e+00> : vector<8x8xf32>
    %75 = tpu.matmul %74, %72, %cst_31 {dimension_numbers = #tpu.dot_dimension_numbers<[1], [0], [0], [1], [0, 0, 1, 1], [], []>} : vector<8x8xf32>, vector<8x8xf32>, vector<8x8xf32> -> vector<8x8xf32>
    %76 = vector.extract_strided_slice %54 {offsets = [16, 0], sizes = [8, 32], strides = [1, 1]} : vector<32x32xf32> to vector<8x32xf32>
    %cst_32 = arith.constant dense<0.000000e+00> : vector<8x32xf32>
    %77 = tpu.matmul %75, %76, %cst_32 {dimension_numbers = #tpu.dot_dimension_numbers<[1], [0], [0], [1], [0, 0, 1, 1], [], []>} : vector<8x8xf32>, vector<8x32xf32>, vector<8x32xf32> -> vector<8x32xf32>
    %78 = arith.addf %71, %77 : vector<8x32xf32>
    %79 = vector.extract_strided_slice %10 {offsets = [0, 88], sizes = [8, 8], strides = [1, 1]} : vector<8x96xf32> to vector<8x8xf32>
    %80 = vector.extract_strided_slice %52 {offsets = [3, 0, 0], sizes = [1, 8, 8], strides = [1, 1, 1]} : vector<4x8x8xf32> to vector<1x8x8xf32>
    %81 = vector.shape_cast %80 : vector<1x8x8xf32> to vector<8x8xf32>
    %cst_33 = arith.constant dense<0.000000e+00> : vector<8x8xf32>
    %82 = tpu.matmul %81, %79, %cst_33 {dimension_numbers = #tpu.dot_dimension_numbers<[1], [0], [0], [1], [0, 0, 1, 1], [], []>} : vector<8x8xf32>, vector<8x8xf32>, vector<8x8xf32> -> vector<8x8xf32>
    %83 = vector.extract_strided_slice %54 {offsets = [24, 0], sizes = [8, 32], strides = [1, 1]} : vector<32x32xf32> to vector<8x32xf32>
    %cst_34 = arith.constant dense<0.000000e+00> : vector<8x32xf32>
    %84 = tpu.matmul %82, %83, %cst_34 {dimension_numbers = #tpu.dot_dimension_numbers<[1], [0], [0], [1], [0, 0, 1, 1], [], []>} : vector<8x8xf32>, vector<8x32xf32>, vector<8x32xf32> -> vector<8x32xf32>
    %85 = arith.addf %78, %84 : vector<8x32xf32>
    %86 = arith.addf %85, %3 : vector<8x32xf32>
    %c0_35 = arith.constant 0 : index
    %c0_36 = arith.constant 0 : index
    %c0_37 = arith.constant 0 : index
    %87 = vector.load %arg11[%c0_35, %c0_36, %c0_37] : memref<1x1x32xf32, #tpu.memory_space<vmem>>, vector<1x1x32xf32>
    %88 = vector.shape_cast %87 : vector<1x1x32xf32> to vector<1x32xf32>
    %c0_38 = arith.constant 0 : index
    %c0_39 = arith.constant 0 : index
    %c0_40 = arith.constant 0 : index
    %89 = vector.load %arg12[%c0_38, %c0_39, %c0_40] : memref<1x1x32xf32, #tpu.memory_space<vmem>>, vector<1x1x32xf32>
    %90 = vector.shape_cast %89 : vector<1x1x32xf32> to vector<1x32xf32>
    %cst_41 = arith.constant dense<0.000000e+00> : vector<8xf32>
    %91 = vector.multi_reduction <add>, %86, %cst_41 [1] : vector<8x32xf32> to vector<8xf32>
    %92 = vector.shape_cast %91 : vector<8xf32> to vector<8x1xf32>
    %cst_42 = arith.constant 3.200000e+01 : f32
    %93 = vector.broadcast %cst_42 : f32 to vector<8x1xf32>
    %94 = arith.divf %92, %93 : vector<8x1xf32>
    %95 = vector.broadcast %94 : vector<8x1xf32> to vector<8x32xf32>
    %96 = arith.subf %86, %95 : vector<8x32xf32>
    %97 = arith.mulf %96, %96 : vector<8x32xf32>
    %cst_43 = arith.constant dense<0.000000e+00> : vector<8xf32>
    %98 = vector.multi_reduction <add>, %97, %cst_43 [1] : vector<8x32xf32> to vector<8xf32>
    %99 = vector.shape_cast %98 : vector<8xf32> to vector<8x1xf32>
    %cst_44 = arith.constant 3.200000e+01 : f32
    %100 = vector.broadcast %cst_44 : f32 to vector<8x1xf32>
    %101 = arith.divf %99, %100 : vector<8x1xf32>
    %102 = vector.broadcast %94 : vector<8x1xf32> to vector<8x32xf32>
    %103 = arith.subf %86, %102 : vector<8x32xf32>
    %cst_45 = arith.constant 9.99999996E-13 : f32
    %104 = vector.broadcast %cst_45 : f32 to vector<8x1xf32>
    %105 = arith.addf %101, %104 : vector<8x1xf32>
    %106 = math.rsqrt %105 : vector<8x1xf32>
    %107 = vector.broadcast %106 : vector<8x1xf32> to vector<8x32xf32>
    %108 = arith.mulf %103, %107 : vector<8x32xf32>
    %109 = vector.broadcast %88 : vector<1x32xf32> to vector<8x32xf32>
    %110 = arith.mulf %108, %109 : vector<8x32xf32>
    %111 = vector.broadcast %90 : vector<1x32xf32> to vector<8x32xf32>
    %112 = arith.addf %110, %111 : vector<8x32xf32>
    %c0_46 = arith.constant 0 : index
    %c0_47 = arith.constant 0 : index
    %c0_48 = arith.constant 0 : index
    %113 = vector.load %arg13[%c0_46, %c0_47, %c0_48] : memref<1x32x64xf32, #tpu.memory_space<vmem>>, vector<1x32x64xf32>
    %114 = vector.shape_cast %113 : vector<1x32x64xf32> to vector<32x64xf32>
    %cst_49 = arith.constant dense<0.000000e+00> : vector<8x64xf32>
    %115 = tpu.matmul %112, %114, %cst_49 {dimension_numbers = #tpu.dot_dimension_numbers<[1], [0], [0], [1], [0, 0, 1, 1], [], []>} : vector<8x32xf32>, vector<32x64xf32>, vector<8x64xf32> -> vector<8x64xf32>
    %c0_50 = arith.constant 0 : index
    %c0_51 = arith.constant 0 : index
    %c0_52 = arith.constant 0 : index
    %116 = vector.load %arg14[%c0_50, %c0_51, %c0_52] : memref<1x1x64xf32, #tpu.memory_space<vmem>>, vector<1x1x64xf32>
    %117 = vector.shape_cast %116 : vector<1x1x64xf32> to vector<1x64xf32>
    %118 = vector.broadcast %117 : vector<1x64xf32> to vector<8x64xf32>
    %119 = arith.addf %115, %118 : vector<8x64xf32>
    %cst_53 = arith.constant 5.000000e-01 : f32
    %120 = vector.broadcast %cst_53 : f32 to vector<8x64xf32>
    %121 = arith.mulf %120, %119 : vector<8x64xf32>
    %cst_54 = arith.constant 0.707106769 : f32
    %122 = vector.broadcast %cst_54 : f32 to vector<8x64xf32>
    %123 = arith.mulf %119, %122 : vector<8x64xf32>
    %124 = math.erf %123 : vector<8x64xf32>
    %cst_55 = arith.constant 1.000000e+00 : f32
    %125 = vector.broadcast %cst_55 : f32 to vector<8x64xf32>
    %126 = arith.addf %125, %124 : vector<8x64xf32>
    %127 = arith.mulf %121, %126 : vector<8x64xf32>
    %c0_56 = arith.constant 0 : index
    %c0_57 = arith.constant 0 : index
    %c0_58 = arith.constant 0 : index
    %128 = vector.load %arg15[%c0_56, %c0_57, %c0_58] : memref<1x64x32xf32, #tpu.memory_space<vmem>>, vector<1x64x32xf32>
    %129 = vector.shape_cast %128 : vector<1x64x32xf32> to vector<64x32xf32>
    %cst_59 = arith.constant dense<0.000000e+00> : vector<8x32xf32>
    %130 = tpu.matmul %127, %129, %cst_59 {dimension_numbers = #tpu.dot_dimension_numbers<[1], [0], [0], [1], [0, 0, 1, 1], [], []>} : vector<8x64xf32>, vector<64x32xf32>, vector<8x32xf32> -> vector<8x32xf32>
    %c0_60 = arith.constant 0 : index
    %c0_61 = arith.constant 0 : index
    %c0_62 = arith.constant 0 : index
    %131 = vector.load %arg16[%c0_60, %c0_61, %c0_62] : memref<1x1x32xf32, #tpu.memory_space<vmem>>, vector<1x1x32xf32>
    %132 = vector.shape_cast %131 : vector<1x1x32xf32> to vector<1x32xf32>
    %133 = vector.broadcast %132 : vector<1x32xf32> to vector<8x32xf32>
    %134 = arith.addf %130, %133 : vector<8x32xf32>
    %135 = arith.addf %134, %112 : vector<8x32xf32>
    %c0_63 = arith.constant 0 : index
    %c0_64 = arith.constant 0 : index
    %c0_65 = arith.constant 0 : index
    %136 = vector.load %arg17[%c0_63, %c0_64, %c0_65] : memref<1x1x32xf32, #tpu.memory_space<vmem>>, vector<1x1x32xf32>
    %137 = vector.shape_cast %136 : vector<1x1x32xf32> to vector<1x32xf32>
    %c0_66 = arith.constant 0 : index
    %c0_67 = arith.constant 0 : index
    %c0_68 = arith.constant 0 : index
    %138 = vector.load %arg18[%c0_66, %c0_67, %c0_68] : memref<1x1x32xf32, #tpu.memory_space<vmem>>, vector<1x1x32xf32>
    %139 = vector.shape_cast %138 : vector<1x1x32xf32> to vector<1x32xf32>
    %cst_69 = arith.constant dense<0.000000e+00> : vector<8xf32>
    %140 = vector.multi_reduction <add>, %135, %cst_69 [1] : vector<8x32xf32> to vector<8xf32>
    %141 = vector.shape_cast %140 : vector<8xf32> to vector<8x1xf32>
    %cst_70 = arith.constant 3.200000e+01 : f32
    %142 = vector.broadcast %cst_70 : f32 to vector<8x1xf32>
    %143 = arith.divf %141, %142 : vector<8x1xf32>
    %144 = vector.broadcast %143 : vector<8x1xf32> to vector<8x32xf32>
    %145 = arith.subf %135, %144 : vector<8x32xf32>
    %146 = arith.mulf %145, %145 : vector<8x32xf32>
    %cst_71 = arith.constant dense<0.000000e+00> : vector<8xf32>
    %147 = vector.multi_reduction <add>, %146, %cst_71 [1] : vector<8x32xf32> to vector<8xf32>
    %148 = vector.shape_cast %147 : vector<8xf32> to vector<8x1xf32>
    %cst_72 = arith.constant 3.200000e+01 : f32
    %149 = vector.broadcast %cst_72 : f32 to vector<8x1xf32>
    %150 = arith.divf %148, %149 : vector<8x1xf32>
    %151 = vector.broadcast %143 : vector<8x1xf32> to vector<8x32xf32>
    %152 = arith.subf %135, %151 : vector<8x32xf32>
    %cst_73 = arith.constant 9.99999996E-13 : f32
    %153 = vector.broadcast %cst_73 : f32 to vector<8x1xf32>
    %154 = arith.addf %150, %153 : vector<8x1xf32>
    %155 = math.rsqrt %154 : vector<8x1xf32>
    %156 = vector.broadcast %155 : vector<8x1xf32> to vector<8x32xf32>
    %157 = arith.mulf %152, %156 : vector<8x32xf32>
    %158 = vector.broadcast %137 : vector<1x32xf32> to vector<8x32xf32>
    %159 = arith.mulf %157, %158 : vector<8x32xf32>
    %160 = vector.broadcast %139 : vector<1x32xf32> to vector<8x32xf32>
    %161 = arith.addf %159, %160 : vector<8x32xf32>
    %c0_74 = arith.constant 0 : index
    %c0_75 = arith.constant 0 : index
    %162 = vector.load %arg23[%c0_74, %c0_75] : memref<8x32xf32, #tpu.memory_space<vmem>>, vector<8x32xf32>
    tpu.vector_store %arg23[%c0_74, %c0_75], %161 {strides = array<i32>} : memref<8x32xf32, #tpu.memory_space<vmem>>, vector<8x32xf32>,
    %c1_i32 = arith.constant 1 : i32
    %163 = arith.cmpi eq, %arg1, %c1_i32 : i32
    %164 = arith.extui %163 : i1 to i32
    %c0_i32_76 = arith.constant 0 : i32
    %165 = arith.cmpi ne, %164, %c0_i32_76 : i32
    scf.if %165 {
      %c0_77 = arith.constant 0 : index
      %c0_78 = arith.constant 0 : index
      %c0_79 = arith.constant 0 : index
      %166 = vector.load %arg21[%c0_77, %c0_78, %c0_79] : memref<1x8x32xf32, #tpu.memory_space<vmem>>, vector<1x8x32xf32>
      %167 = vector.shape_cast %166 : vector<1x8x32xf32> to vector<8x32xf32>
      %168 = vector.shape_cast %161 : vector<8x32xf32> to vector<1x8x32xf32>
      tpu.vector_store %arg21[%c0_77, %c0_78, %c0_79], %168 {strides = array<i32>} : memref<1x8x32xf32, #tpu.memory_space<vmem>>, vector<1x8x32xf32>,
      %169 = vector.extract_strided_slice %161 {offsets = [0, 0], sizes = [1, 32], strides = [1, 1]} : vector<8x32xf32> to vector<1x32xf32>
      %c0_80 = arith.constant 0 : index
      %c0_81 = arith.constant 0 : index
      %170 = vector.load %arg19[%c0_80, %c0_81] : memref<32x32xf32, #tpu.memory_space<vmem>>, vector<32x32xf32>
      %cst_82 = arith.constant dense<0.000000e+00> : vector<1x32xf32>
      %171 = tpu.matmul %169, %170, %cst_82 {dimension_numbers = #tpu.dot_dimension_numbers<[1], [0], [0], [1], [0, 0, 1, 1], [], []>} : vector<1x32xf32>, vector<32x32xf32>, vector<1x32xf32> -> vector<1x32xf32>
      %c0_83 = arith.constant 0 : index
      %c0_84 = arith.constant 0 : index
      %172 = vector.load %arg20[%c0_83, %c0_84] : memref<1x32xf32, #tpu.memory_space<vmem>>, vector<1x32xf32>
      %173 = arith.addf %171, %172 : vector<1x32xf32>
      %174 = math.tanh %173 : vector<1x32xf32>
      %c0_85 = arith.constant 0 : index
      %c0_86 = arith.constant 0 : index
      %c0_87 = arith.constant 0 : index
      %175 = vector.load %arg22[%c0_85, %c0_86, %c0_87] : memref<1x1x32xf32, #tpu.memory_space<vmem>>, vector<1x1x32xf32>
      %176 = vector.shape_cast %175 : vector<1x1x32xf32> to vector<1x32xf32>
      %177 = vector.shape_cast %174 : vector<1x32xf32> to vector<1x1x32xf32>
      tpu.vector_store %arg22[%c0_85, %c0_86, %c0_87], %177 {strides = array<i32>} : memref<1x1x32xf32, #tpu.memory_space<vmem>>, vector<1x1x32xf32>,
    } else {
    }
    return
  }
  func.func @transform_0(%arg0: i32, %arg1: i32) -> (i32, i32, i32) {
    %c0_i32 = arith.constant 0 : i32
    %c0_i32_0 = arith.constant 0 : i32
    %c0_i32_1 = arith.constant 0 : i32
    return %arg0, %c0_i32, %c0_i32_0 : i32, i32, i32
  }
  func.func @transform_1(%arg0: i32, %arg1: i32) -> (i32, i32) {
    %c0_i32 = arith.constant 0 : i32
    %c0_i32_0 = arith.constant 0 : i32
    %c0_i32_1 = arith.constant 0 : i32
    return %c0_i32, %c0_i32_0 : i32, i32
  }
  func.func @transform_2(%arg0: i32, %arg1: i32) -> (i32, i32) {
    %c0_i32 = arith.constant 0 : i32
    %c0_i32_0 = arith.constant 0 : i32
    %c0_i32_1 = arith.constant 0 : i32
    return %c0_i32, %c0_i32_0 : i32, i32
  }
  func.func @transform_3(%arg0: i32, %arg1: i32) -> (i32, i32) {
    %c0_i32 = arith.constant 0 : i32
    %c0_i32_0 = arith.constant 0 : i32
    %c0_i32_1 = arith.constant 0 : i32
    return %c0_i32, %c0_i32_0 : i32, i32
  }
  func.func @transform_4(%arg0: i32, %arg1: i32) -> (i32, i32, i32) {
    %c0_i32 = arith.constant 0 : i32
    %c0_i32_0 = arith.constant 0 : i32
    %c0_i32_1 = arith.constant 0 : i32
    return %arg0, %c0_i32, %c0_i32_0 : i32, i32, i32
  }
  func.func @transform_5(%arg0: i32, %arg1: i32) -> (i32, i32, i32) {
    %c0_i32 = arith.constant 0 : i32
    %c0_i32_0 = arith.constant 0 : i32
    %c0_i32_1 = arith.constant 0 : i32
    return %arg1, %c0_i32, %c0_i32_0 : i32, i32, i32
  }
  func.func @transform_6(%arg0: i32, %arg1: i32) -> (i32, i32, i32) {
    %c0_i32 = arith.constant 0 : i32
    %c0_i32_0 = arith.constant 0 : i32
    %c0_i32_1 = arith.constant 0 : i32
    return %arg1, %c0_i32, %c0_i32_0 : i32, i32, i32
  }
  func.func @transform_7(%arg0: i32, %arg1: i32) -> (i32, i32, i32) {
    %c0_i32 = arith.constant 0 : i32
    %c0_i32_0 = arith.constant 0 : i32
    %c0_i32_1 = arith.constant 0 : i32
    return %arg1, %c0_i32, %c0_i32_0 : i32, i32, i32
  }
  func.func @transform_8(%arg0: i32, %arg1: i32) -> (i32, i32, i32) {
    %c0_i32 = arith.constant 0 : i32
    %c0_i32_0 = arith.constant 0 : i32
    %c0_i32_1 = arith.constant 0 : i32
    return %arg1, %c0_i32, %c0_i32_0 : i32, i32, i32
  }
  func.func @transform_9(%arg0: i32, %arg1: i32) -> (i32, i32, i32) {
    %c0_i32 = arith.constant 0 : i32
    %c0_i32_0 = arith.constant 0 : i32
    %c0_i32_1 = arith.constant 0 : i32
    return %arg1, %c0_i32, %c0_i32_0 : i32, i32, i32
  }
  func.func @transform_10(%arg0: i32, %arg1: i32) -> (i32, i32, i32) {
    %c0_i32 = arith.constant 0 : i32
    %c0_i32_0 = arith.constant 0 : i32
    %c0_i32_1 = arith.constant 0 : i32
    return %arg1, %c0_i32, %c0_i32_0 : i32, i32, i32
  }
  func.func @transform_11(%arg0: i32, %arg1: i32) -> (i32, i32, i32) {
    %c0_i32 = arith.constant 0 : i32
    %c0_i32_0 = arith.constant 0 : i32
    %c0_i32_1 = arith.constant 0 : i32
    return %arg1, %c0_i32, %c0_i32_0 : i32, i32, i32
  }
  func.func @transform_12(%arg0: i32, %arg1: i32) -> (i32, i32, i32) {
    %c0_i32 = arith.constant 0 : i32
    %c0_i32_0 = arith.constant 0 : i32
    %c0_i32_1 = arith.constant 0 : i32
    return %arg1, %c0_i32, %c0_i32_0 : i32, i32, i32
  }
  func.func @transform_13(%arg0: i32, %arg1: i32) -> (i32, i32, i32) {
    %c0_i32 = arith.constant 0 : i32
    %c0_i32_0 = arith.constant 0 : i32
    %c0_i32_1 = arith.constant 0 : i32
    return %arg1, %c0_i32, %c0_i32_0 : i32, i32, i32
  }
  func.func @transform_14(%arg0: i32, %arg1: i32) -> (i32, i32, i32) {
    %c0_i32 = arith.constant 0 : i32
    %c0_i32_0 = arith.constant 0 : i32
    %c0_i32_1 = arith.constant 0 : i32
    return %arg1, %c0_i32, %c0_i32_0 : i32, i32, i32
  }
  func.func @transform_15(%arg0: i32, %arg1: i32) -> (i32, i32, i32) {
    %c0_i32 = arith.constant 0 : i32
    %c0_i32_0 = arith.constant 0 : i32
    %c0_i32_1 = arith.constant 0 : i32
    return %arg1, %c0_i32, %c0_i32_0 : i32, i32, i32
  }
  func.func @transform_16(%arg0: i32, %arg1: i32) -> (i32, i32, i32) {
    %c0_i32 = arith.constant 0 : i32
    %c0_i32_0 = arith.constant 0 : i32
    %c0_i32_1 = arith.constant 0 : i32
    return %arg1, %c0_i32, %c0_i32_0 : i32, i32, i32
  }
  func.func @transform_17(%arg0: i32, %arg1: i32) -> (i32, i32) {
    %c0_i32 = arith.constant 0 : i32
    %c0_i32_0 = arith.constant 0 : i32
    %c0_i32_1 = arith.constant 0 : i32
    return %c0_i32, %c0_i32_0 : i32, i32
  }
  func.func @transform_18(%arg0: i32, %arg1: i32) -> (i32, i32) {
    %c0_i32 = arith.constant 0 : i32
    %c0_i32_0 = arith.constant 0 : i32
    %c0_i32_1 = arith.constant 0 : i32
    return %c0_i32, %c0_i32_0 : i32, i32
  }
  func.func @transform_19(%arg0: i32, %arg1: i32) -> (i32, i32, i32) {
    %c0_i32 = arith.constant 0 : i32
    %c0_i32_0 = arith.constant 0 : i32
    %c0_i32_1 = arith.constant 0 : i32
    return %arg0, %c0_i32, %c0_i32_0 : i32, i32, i32
  }
  func.func @transform_20(%arg0: i32, %arg1: i32) -> (i32, i32, i32) {
    %c0_i32 = arith.constant 0 : i32
    %c0_i32_0 = arith.constant 0 : i32
    %c0_i32_1 = arith.constant 0 : i32
    return %arg0, %c0_i32, %c0_i32_0 : i32, i32, i32
  }
}

</mosaic_0001>

<bundles_post_ra>
// kernel: _lambda_.1
= control target key start
LH: loop header
LB: loop body
LE: loop exit
PB: predicated region body
PF: predicated region fallthrough
CT: control target
= control target key end

     0   :  { %s3585_s0 = inlined_call_operand.vmem [shape: f32[2,8,32], index: 0, kind: input, shape index: {}]   ;;  %s3586_s1 = inlined_call_operand.vmem [shape: f32[8,32], index: 1, kind: input, shape index: {}]   ;;  %s3587_s2 = inlined_call_operand.vmem [shape: f32[1,32], index: 2, kind: input, shape index: {}]   ;;  %s3588_s3 = inlined_call_operand.vmem [shape: f32[1,32], index: 3, kind: input, shape index: {}]   ;;  %s3589_s4 = inlined_call_operand.vmem [shape: f32[2,1,8], index: 4, kind: input, shape index: {}]   ;;  %s3590_s5 = inlined_call_operand.vmem [shape: f32[2,32,96], index: 5, kind: input, shape index: {}]   ;;  %s3591_s6 = inlined_call_operand.vmem [shape: f32[2,1,96], index: 6, kind: input, shape index: {}]   ;;  %s3592_s7 = inlined_call_operand.vmem [shape: f32[2,32,32], index: 7, kind: input, shape index: {}]   ;;  %s3593_s8 = inlined_call_operand.vmem [shape: f32[2,1,32], index: 8, kind: input, shape index: {}]   ;;  %s3594_s9 = inlined_call_operand.vmem [shape: f32[2,1,32], index: 9, kind: input, shape index: {}]   ;;  %s3595_s10 = inlined_call_operand.vmem [shape: f32[2,1,32], index: 10, kind: input, shape index: {}]   ;;  %s3596_s11 = inlined_call_operand.vmem [shape: f32[2,32,64], index: 11, kind: input, shape index: {}]   ;;  %s3597_s12 = inlined_call_operand.vmem [shape: f32[2,1,64], index: 12, kind: input, shape index: {}]   ;;  %s3598_s13 = inlined_call_operand.vmem [shape: f32[2,64,32], index: 13, kind: input, shape index: {}]   ;;  %s3599_s14 = inlined_call_operand.vmem [shape: f32[2,1,32], index: 14, kind: input, shape index: {}]   ;;  %s3600_s15 = inlined_call_operand.vmem [shape: f32[2,1,32], index: 15, kind: input, shape index: {}]   ;;  %s3601_s16 = inlined_call_operand.vmem [shape: f32[2,1,32], index: 16, kind: input, shape index: {}]   ;;  %s3602_s17 = inlined_call_operand.vmem [shape: f32[32,32], index: 17, kind: input, shape index: {}]   ;;  %s3603_s18 = inlined_call_operand.vmem [shape: f32[1,32], index: 18, kind: input, shape index: {}]   ;;  %s3604_s19 = inlined_call_operand.hbm [shape: f32[2,8,32], index: 19, kind: output, shape index: {0}]   ;;  %s3605_s20 = inlined_call_operand.hbm [shape: f32[2,1,32], index: 20, kind: output, shape index: {1}]  }
   0x1   :  { %3623 = sst [smem:[#allocation22_spill]] %s3585_s0 }
   0x2   :  { %3624 = sst [smem:[#allocation23_spill]] %s3586_s1 }
   0x3   :  { %3625 = sst [smem:[#allocation24_spill]] %s3587_s2 }
   0x4   :  { %3626 = sst [smem:[#allocation25_spill]] %s3588_s3 }
   0x5   :  { %3627 = sst [smem:[#allocation26_spill]] %s3589_s4 }
   0x6   :  { %3628 = sst [smem:[#allocation27_spill]] %s3590_s5 }
   0x7   :  { %3629 = sst [smem:[#allocation28_spill]] %s3592_s7 }
   0x8   :  { %3630 = sst [smem:[#allocation29_spill]] %s3594_s9 }
   0x9   :  { %3631 = sst [smem:[#allocation30_spill]] %s3595_s10 }
   0xa   :  { %3632 = sst [smem:[#allocation31_spill]] %s3596_s11 }
   0xb   :  { %3633 = sst [smem:[#allocation32_spill]] %s3598_s13 }
   0xc   :  { %3634 = sst [smem:[#allocation33_spill]] %s3600_s15 }
   0xd   :  { %3635 = sst [smem:[#allocation34_spill]] %s3601_s16 }
   0xe   :  { %3636 = sst [smem:[#allocation35_spill]] %s3602_s17 }
   0xf   :  { %3637 = sst [smem:[#allocation36_spill]] %s3603_s18 }
  0x10   :  { %3638 = sst [smem:[#allocation37_spill]] %s3604_s19 }
  0x11   :  { %3639 = sst [smem:[#allocation38_spill]] %s3605_s20 }
  0x12   :  { %26 = vsyncpa [#allocation4], 0 }
  0x13   :  { %28 = vsyncpa [#allocation4 + $0x1], 0 }
  0x14   :  { %29 = vsyncpa [#allocation6], 0 }
  0x15   :  { %31 = vsyncpa [#allocation6 + $0x1], 0  ;;  %s3162_s1 = smov 0   ;;  %s3164_s22 = smov 0  }
  0x16   :  { %s3166_s23 = smov 0   ;;  %s3168_s24 = smov 0  }
  0x17   :  { %s3170_s2 = smov 0   ;;  %s3172_s25 = smov 0  }
  0x18   :  { %s3174_s3 = smov 0   ;;  %s3176_s26 = smov 0  }
  0x19 LB: > { %3640 = sst [smem:[#allocation9_spill]] %s3008_s1  ;;  %s2544_s27 = sadd.s32 4294967295, %s3036_s26   ;;  %s3036_s26 = sphi %s3176_s26, %s37_s26   ;;  %s3032_s3 = sphi %s3174_s3, %s3697_s3   ;;  %s3028_s25 = sphi %s3172_s25, %s3696_s25   ;;  %s3024_s2 = sphi %s3170_s2, %s3695_s2   ;;  %s3020_s24 = sphi %s3168_s24, %s3694_s24   ;;  %s3016_s23 = sphi %s3166_s23, %s3693_s23   ;;  %s3012_s22 = sphi %s3164_s22, %s3692_s22   ;;  %s3008_s1 = sphi %s3162_s1, %s3691_s1  }
  0x1a   : > { %3641 = sst [smem:[#allocation10_spill]] %s3012_s22  ;;  %s2545_s28 = sadd.s32 4294967294, %s3036_s26  }
  0x1b   : > { %3642 = sst [smem:[#allocation11_spill]] %s3016_s23  ;;  %s46_s4 = sadd.s32 1, %s3028_s25 }
  0x1c   : > { %3643 = sst [smem:[#allocation12_spill]] %s3020_s24  ;;  %p47_p0 = scmp.ge.s32.totalorder %s46_s4, 2 }
  0x1d   : > { %3644 = sst [smem:[#allocation13_spill]] %s3024_s2  ;;  %s49_s29 = sadd.s32 1, %s3032_s3 }
  0x1e   : > { %3645 = sst [smem:[#allocation14_spill]] %s3028_s25  ;;  %p535_p1 = scmp.ne.s32.totalorder %s3016_s23, %s3012_s22 }
  0x1f   : > { %3646 = sst [smem:[#allocation15_spill]] %s3032_s3  ;;  %p536_p2 = scmp.eq.s32.totalorder %s2544_s27, 3 }
  0x20   : > { %3647 = sst [smem:[#allocation16_spill]] %s3036_s26  ;;  %s3699_s4 = smov (%p47_p0, %s46_s4), 0 }
  0x21   : > { %3648 = sst [smem:[#allocation17_spill]] %s3699_s4  ;;  %s3701_s29 = smov (!%p47_p0, %s49_s29), %s3032_s3 }
  0x22   : > { %p3211_p3 = por %p536_p2, %p535_p1  ;;  %p541_p4 = scmp.ne.s32.totalorder %s3012_s22, %s3008_s1 }
  0x23   : > { %p51_p5 = scmp.ge.s32.totalorder %s3701_s29, 2  ;;  %p542_p6 = scmp.eq.s32.totalorder %s2545_s28, 3 }
  0x24   : > { %s3649_s30 = scalar_select %p3211_p3, 1, 0 }
  0x25   : > { %p2548_p7 = scmp.ge.s32.totalorder %s3036_s26, 1  ;;  %p694_p8 = scmp.lt.s32.totalorder %s3036_s26, 5 }
  0x26   : > { %3650 = sst [smem:[#allocation18_spill]] %s3649_s30  ;;  %s3703_s29 = smov (%p51_p5, %s3701_s29), 0 }
  0x27   : > { %3651 = sst [smem:[#allocation19_spill]] %s3703_s29  ;;  %p3221_p9 = por %p542_p6, %p541_p4 }
  0x28   : > { %p695_p10 = pnand %p2548_p7, %p694_p8  ;;  %s522_s21 = ssub.s32 %s3032_s3, %s3703_s29 }
  0x29   : > { %s3652_s0 = scalar_select %p3221_p9, 1, 0 }
  0x2a   : > { %s525_s27 = sadd.s32 1, %s3016_s23  ;;  %p523_p11 = scmp.eq.s32.totalorder %s522_s21, 0 }
  0x2b   : > { %3653 = sst [smem:[#allocation20_spill]] %s3652_s0  ;;  %698 = sbr.rel (%p695_p10) target bundleno = 3094 (0xc16), region = 96 }
  0x2c   : > { %s3229_s4 = scalar_select %p523_p11, %s3016_s23, %s525_s27  }
  0x2d   : > { %s3232_s28 = sand.u32 (!%p695_p10), 1, %s3012_s22   ;;  %p802_p12 = scmp.lt.s32.totalorder (!%p695_p10), %s3024_s2, 1 }
  0x2e   : > { %3654 = sst [smem:[#allocation21_spill]] %s3229_s4  ;;  %s2549_s25 = sshll.u32 (!%p695_p10), %s3232_s28, 3 }
  0x2f   : > { %p809_p13 = scmp.lt.s32.totalorder (!%p695_p10), %s3020_s24, 1  ;;  %s3656_s26 = sld [smem:[#allocation22_spill]] (!%p695_p10) }
  0x30   : > { %s3657_s5 = sld [smem:[#allocation27_spill]] (!%p695_p10)  ;;  %s3658_s7 = sld [smem:[#allocation28_spill]] (!%p695_p10) }
  0x31   : > { %s3661_s11 = sld [smem:[#allocation31_spill]] (!%p695_p10)  ;;  %s3663_s23 = sld [smem:[#allocation33_spill]] (!%p695_p10) }
  0x32   : > { %s3238_s1 = scalar_select %p802_p12, %s3024_s2, 1 }
  0x33   : > { %s3241_s29 = scalar_select %p809_p13, %s3020_s24, 1 }
  0x34   : > { %s2550_s21 = sshll.u32 %s3238_s1, 3  ;;  %s3305_s13 = scalar_lea.vmem [#allocation3], %s2549_s25 }
  0x35   : > { %s805_s20 = scalar_lea.vmem %s3656_s26, %s2550_s21  ;;  %s2597_s19 = sshll.u32 %s3241_s29, 5 }
  0x36   : > { %s3255_s18 = scalar_lea.vmem %s3657_s5, %s2597_s19  ;;  %s3264_s3 = scalar_lea.vmem %s3658_s7, %s2597_s19 }
  0x37   : > { %s3281_s24 = scalar_lea.vmem %s3661_s11, %s2597_s19  ;;  %s2600_s7 = sshll.u32 %s3241_s29, 6 }
  0x38   : > { %s846_s22 = scalar_lea.vmem %s3599_s14, %s3241_s29  ;;  %s3662_s21 = sld [smem:[#allocation32_spill]] }
  0x39   : > { %s849_s5 = scalar_lea.vmem %s3663_s23, %s3241_s29  ;;  %s3664_s11 = sld [smem:[#allocation34_spill]] }
  0x3a   : > { %s801_s15 = scalar_lea.vmem [#allocation5], %s3232_s28  ;;  %s3665_s16 = sld [smem:[#allocation12_spill]] }
  0x3e   : > { %s3295_s9 = scalar_lea.vmem %s3662_s21, %s2600_s7 }
  0x3f   : > { %s852_s10 = scalar_lea.vmem %s3664_s11, %s3241_s29 }
  0x40   : > { %p2559_p0 = scmp.ne.s32.totalorder %s3665_s16, 0 }
  0x41   : > { %v857_v0 = vld [vmem:[%s805_s20] sm:$0xff] (!%p2559_p0)  ;;  %s3666_s26 = sld [smem:[#allocation23_spill]] (!%p2559_p0)  ;;  %vm862_vm0 = vcmask (!%p2559_p0), 261120   ;;  %s3667_s16 = sld [smem:[#allocation24_spill]] (!%p2559_p0) }
  0x42   : > { %856 = sbr.rel (%p2559_p0) target bundleno = 388 (0x184), region = 100  ;;  %s3668_s25 = sld [smem:[#allocation25_spill]] (!%p2559_p0) }
  0x47   : > { %v858_v1 = vld [vmem:[%s3666_s26] sm:$0xff] (!%p2559_p0) }
  0x48   : > { %v859_v2 = vadd.f32 (!%p2559_p0), %v858_v1, %v857_v0  ;;  %v2560_v13 = vld [vmem:[%s3667_s16] ss:$0 sm:$0xff] (!%p2559_p0) }
  0x49   : > { %v2561_v15 = vld [vmem:[%s3668_s25] ss:$0 sm:$0xff] }
  0x4a   : > { %v863_v3 = vsel %vm862_vm0, %v859_v2, 0.0 }
  0x4b   : > { %864 = vadd.xlane.f32.xlu0 %v863_v3 }
  0xd8   : > { %v865_v4 = vpop.xlane.xlu0 %864 }
  0xd9   : > { %v867_v5 = vmul.f32 0.03125, %v865_v4 }
  0xdb   : > { %v868_v6 = vsub.f32 %v859_v2, %v867_v5 }
  0xdd   : > { %v869_v7 = vmul.f32 %v868_v6, %v868_v6 }
  0xdf   : > { %v870_v8 = vsel %vm862_vm0, %v869_v7, 0.0 }
  0xe0   : > { %871 = vadd.xlane.f32.xlu0 %v870_v8 }
 0x16d   : > { %v872_v9 = vpop.xlane.xlu0 %871 }
 0x16e   : > { %v873_v10 = vmul.f32 0.03125, %v872_v9 }
 0x170   : > { %v874_v11 = vadd.f32 1e-12, %v873_v10 }
 0x172   : > { %2884 = vrsqrt.f32 %v874_v11 }
 0x17c   : > { %v2885_v12 = vpop.eup %2884 }
 0x17d   : > { %v876_v14 = vmul.f32 %v2885_v12, %v868_v6 }
 0x17f   : > { %v883_v16 = vmul.f32 %v2560_v13, %v876_v14 }
 0x181   : > { %v890_v17 = vadd.f32 %v2561_v15, %v883_v16 }
 0x183   : > { %891 = vst.msk [vmem:[#allocation2] sm:$0xff] %vm862_vm0, %v890_v17 }
 0x184 PF: > { %v893_v18 = vld [vmem:[%s3255_s18] sm:$0xff]  ;;  %v894_v19 = vld [vmem:[%s3255_s18 + $0x8] sm:$0xff]  ;;  %v895_v20 = vld [vmem:[%s3255_s18 + $0x10] sm:$0xff]  ;;  %v3038_v21 = vmov 0.0|0.0   ;;  %vm3039_vm1 = vmmov 0   ;;  %v3040_v24 = vmov 0.0   ;;  %s3669_s0 = scalar_lea.vmem %s3591_s6, %s3241_s29 }
 0x185   : > { %2761 = vmatprep.subr.bf16.mxu0 %v3038_v21  ;;  %v2762_v22 = vpack.c.bf16 %v894_v19, %v893_v18  ;;  %v896_v23 = vld [vmem:[%s3255_s18 + $0x18] sm:$0xff]  ;;  %2657 = vmatprep.mubr.msk.f32.mxu0 %vm3039_vm1, %v3040_v24  ;;  %vm904_vm2 = vcmask 261120   ;;  %v2562_v27 = vld [vmem:[%s3669_s0] ss:$0 sm:$0xff]  ;;  %s3041_s2 = smov 120   ;;  %s3042_s30 = smov 96  }
 0x186   : > { %2665 = vmatprep.subr.mxu1 %v3040_v24  ;;  %2667 = vmatprep.mubr.msk.f32.mxu1 %vm3039_vm1, %v3040_v24  ;;  %v2765_v25 = vpack.c.bf16 %v896_v23, %v895_v20  ;;  %s3043_s19 = smov 80   ;;  %s3044_s17 = smov 88   ;;  %vm981_vm3 = vcmask 64512   ;;  %vm2095_vm4 = vcmask 523264  }
 0x187   : > { %2763 = vmatpush3.bf16.msra.mxu0 %v2762_v22  ;;  %s3045_s4 = smov 72   ;;  %s3046_s27 = smov 112  }
 0x188   : > { %2764 = vmatprep.subr.bf16.mxu0 %v3038_v21  ;;  %s3047_s26 = smov 104   ;;  %s3670_s16 = sld [smem:[#allocation26_spill]] }
 0x189   : > { %s3049_s23 = smov 64   ;;  %s3050_s25 = smov 48  }
 0x18a   : > { %v3332_v26 = vld [vmem:[#allocation2] sm:$0xff]  ;;  %s3051_s18 = smov 40   ;;  %s3680_s0 = sld [smem:[#allocation12_spill]] }
 0x18b   : > { %2766 = vmatpush3.bf16.msra.mxu0 %v2765_v25 }
 0x18c   : > { %2660 = vmatprep.subr.mxu0 %v3040_v24 }
 0x18e   : > { %2658 = vmatmul.mubr.msk.f32.vlgmr.msra.gmra.mrb[0].mxu0 %vm904_vm2, %v3332_v26  ;;  %s3671_s20 = scalar_lea.vmem %s3670_s16, %s3238_s1  ;;  %s3048_s1 = smov 56  }
 0x18f   : > { %2662 = vmatprep.mubr.msk.f32.mxu0 %vm3039_vm1, %v3040_v24  ;;  %v2572_v39 = vld [vmem:[%s3671_s20] ss:$0 sm:$0xff]  ;;  %s3677_s16 = scalar_lea.vmem %s3597_s12, %s3241_s29 }
 0x190   : > { %p2590_p1 = scmp.ne.s32.totalorder %s3680_s0, 1 }
 0x191   : > { %vm3053_vm5 = vmmov (!%p2590_p1), 0   ;;  %vm2284_vm6 = vcmask (!%p2590_p1), 253952  }
 0x261   : > { %v974_v28 = vpop.f32.mrb[0].mxu0 }
 0x262   : > { %v3344_v29 = vadd.f32 %v2562_v27, %v974_v28  ;;  %v2659_v30 = vpop.f32.mrb[1].mxu0 }
 0x264   : > { %1057 = vrot.lane.b32.xlu1 %v3344_v29, %s3041_s2  ;;  %979 = vrot.lane.b32.xlu0 %v3344_v29, %s3042_s30  ;;  %s3681_s30 = sld [smem:[#allocation35_spill]] (!%p2590_p1) }
 0x268   : > { %1138 = vrot.lane.b32.xlu1 %v3344_v29, %s3043_s19  ;;  %1059 = vrot.lane.b32.xlu0 %v3344_v29, %s3044_s17  ;;  %s3673_s19 = sld [smem:[#allocation29_spill]] }
 0x26c   : > { %1217 = vrot.lane.b32.xlu1 %v3344_v29, %s3045_s4  ;;  %1136 = vrot.lane.b32.xlu0 %v3344_v29, %s3046_s27  ;;  %s3675_s27 = sld [smem:[#allocation30_spill]] }
 0x26e   : > { %s3674_s17 = scalar_lea.vmem %s3673_s19, %s3241_s29 }
 0x270   : > { %1215 = vrot.lane.b32.xlu0 %v3344_v29, %s3047_s26 }
 0x272   : > { %s3676_s26 = scalar_lea.vmem %s3675_s27, %s3241_s29 }
 0x2d6   : > { %v1058_v31 = vpop.permute.xlu1 %1057  ;;  %v980_v32 = vpop.permute.xlu0 %979 }
 0x2d7   : > { %2661 = vmatpush3.xpose.msk.msra.mxu0 %vm981_vm3, %v980_v32 }
 0x2d8   : > { %2670 = vmatprep.subr.mxu0 %v3040_v24 }
 0x2da   : > { %v1139_v33 = vpop.permute.xlu1 %1138  ;;  %2663 = vmatmul.mubr.msk.f32.vlgmr.msra.gmra.mrb[2].mxu0 %vm981_vm3, %v3344_v29  ;;  %v1060_v34 = vpop.permute.xlu0 %1059 }
 0x2db   : > { %2666 = vmatpush3.xpose.msk.msra.mxu1 %vm981_vm3, %v1060_v34  ;;  %2671 = vmatpush3.xpose.msk.msra.mxu0 %vm981_vm3, %v1139_v33  ;;  %v1349_v34 = vld [vmem:[%s3264_s3] sm:$0xff] }
 0x2dc   : > { %2672 = vmatprep.mubr.msk.f32.mxu0 %vm3039_vm1, %v3040_v24  ;;  %2675 = vmatprep.subr.mxu1 %v3040_v24 }
 0x2dd   : > { %2680 = vmatprep.subr.mxu0 %v3040_v24 }
 0x2de   : > { %v1218_v35 = vpop.permute.xlu1 %1217  ;;  %2668 = vmatmul.mubr.msk.f32.vlgmr.msra.gmra.mrb[0].mxu1 %vm981_vm3, %v1058_v31  ;;  %v1137_v36 = vpop.permute.xlu0 %1136 }
 0x2df   : > { %2673 = vmatmul.mubr.msk.f32.vlgmr.msra.gmra.mrb[4].mxu0 %vm981_vm3, %v1137_v36  ;;  %2676 = vmatpush3.xpose.msk.msra.mxu1 %vm981_vm3, %v1218_v35  ;;  %v1350_v35 = vld [vmem:[%s3264_s3 + $0x8] sm:$0xff] }
 0x2e0   : > { %2677 = vmatprep.mubr.msk.f32.mxu1 %vm3039_vm1, %v3040_v24  ;;  %2682 = vmatprep.mubr.msk.f32.mxu0 %vm3039_vm1, %v3040_v24 }
 0x2e1   : > { %2685 = vmatprep.subr.mxu1 %v3040_v24 }
 0x2e2   : > { %v1216_v37 = vpop.permute.xlu0 %1215 }
 0x2e3   : > { %2678 = vmatmul.mubr.msk.f32.vlgmr.msra.gmra.mrb[2].mxu1 %vm981_vm3, %v1216_v37 }
 0x2e4   : > { %2687 = vmatprep.mubr.msk.f32.mxu1 %vm3039_vm1, %v3040_v24  ;;  %2686 = vmatpush3.msra.mxu1 %v1349_v34 }
 0x2e5   : > { %2695 = vmatprep.subr.mxu1 %v3040_v24 }
 0x3ad   : > { %v1052_v38 = vpop.f32.mrb[2].mxu0 }
 0x3ae   : > { %v1056_v40 = vmul.f32 0.35355338, %v1052_v38  ;;  %v2664_v41 = vpop.f32.mrb[3].mxu0  ;;  %v1351_v38 = vld [vmem:[%s3264_s3 + $0x10] sm:$0xff] }
 0x3af   : > { %v1352_v41 = vld [vmem:[%s3264_s3 + $0x18] sm:$0xff]  ;;  %s3672_s3 = scalar_lea.vmem %s3593_s8, %s3241_s29 }
 0x3b0   : > { %v1301_v42 = vadd.f32 %v2572_v39, %v1056_v40 }
 0x3b1   : > { %v1131_v43 = vpop.f32.mrb[0].mxu1 }
 0x3b2   : > { %v1135_v44 = vmul.f32 0.35355338, %v1131_v43  ;;  %v2669_v45 = vpop.f32.mrb[1].mxu1  ;;  %v1210_v46 = vpop.f32.mrb[4].mxu0  ;;  %v1305_v47 = vsel %vm981_vm3, %v1301_v42, -inf }
 0x3b3   : > { %v1214_v48 = vmul.f32 0.35355338, %v1210_v46  ;;  %1306 = vmax.xlane.f32.xlu1 %v1305_v47  ;;  %v2674_v49 = vpop.f32.mrb[5].mxu0  ;;  %v2575_v46 = vld [vmem:[%s3672_s3] ss:$0 sm:$0xff] }
 0x3b4   : > { %v1302_v50 = vadd.f32 %v2572_v39, %v1135_v44 }
 0x3b5   : > { %v1303_v53 = vadd.f32 %v2572_v39, %v1214_v48 }
 0x3b6   : > { %v1289_v51 = vpop.f32.mrb[2].mxu1  ;;  %v1308_v52 = vsel %vm981_vm3, %v1302_v50, -inf }
 0x3b7   : > { %v1293_v54 = vmul.f32 0.35355338, %v1289_v51  ;;  %1309 = vmax.xlane.f32.xlu0 %v1308_v52  ;;  %v2679_v55 = vpop.f32.mrb[3].mxu1  ;;  %v1311_v57 = vsel %vm981_vm3, %v1303_v53, -inf }
 0x3b9   : > { %v1304_v56 = vadd.f32 %v2572_v39, %v1293_v54 }
 0x3bb   : > { %1312 = vmax.xlane.f32.xlu0 %v1311_v57  ;;  %v1314_v58 = vsel %vm981_vm3, %v1304_v56, -inf }
 0x3bc   : > { %1315 = vmax.xlane.f32.xlu1 %v1314_v58 }
 0x3cd   : > { %1510 = vrot.lane.b32.xlu1 %v3344_v29, %s3048_s1 }
 0x440   : > { %v1307_v59 = vpop.xlane.xlu1 %1306 }
 0x441   : > { %v1317_v60 = vsub.f32 %v1301_v42, %v1307_v59 }
 0x443   : > { %v1321_v61 = vmul.f32 1.442695, %v1317_v60 }
 0x444   : > { %v1310_v62 = vpop.xlane.xlu0 %1309 }
 0x445   : > { %2886 = vpow2.f32 %v1321_v61  ;;  %v1318_v63 = vsub.f32 %v1302_v50, %v1310_v62 }
 0x447   : > { %v1323_v0 = vmul.f32 1.442695, %v1318_v63 }
 0x448   : > { %v1313_v10 = vpop.xlane.xlu0 %1312 }
 0x449   : > { %2888 = vpow2.f32 %v1323_v0  ;;  %v1316_v1 = vpop.xlane.xlu1 %1315  ;;  %v1319_v11 = vsub.f32 %v1303_v53, %v1313_v10  ;;  %v2582_v10 = vld [vmem:[%s3674_s17] ss:$0 sm:$0xff] }
 0x44a   : > { %v1320_v2 = vsub.f32 %v1304_v56, %v1316_v1  ;;  %v1991_v1 = vld [vmem:[%s3281_s24] sm:$0xff] }
 0x44b   : > { %v1325_v12 = vmul.f32 1.442695, %v1319_v11 }
 0x44c   : > { %v1327_v3 = vmul.f32 1.442695, %v1320_v2  ;;  %v1992_v2 = vld [vmem:[%s3281_s24 + $0x8] sm:$0xff] }
 0x44d   : > { %v1511_v15 = vpop.permute.xlu1 %1510 }
 0x44e   : > { %2890 = vpow2.f32 %v1327_v3  ;;  %v2768_v3 = vpack.c.bf16 %v1992_v2, %v1991_v1 }
 0x44f   : > { %v2887_v4 = vpop.eup %2886  ;;  %2892 = vpow2.f32 %v1325_v12  ;;  %v2583_v12 = vld [vmem:[%s3676_s26] ss:$0 sm:$0xff]  ;;  %s3682_s26 = sld [smem:[#allocation36_spill]] (!%p2590_p1) }
 0x450   : > { %v1329_v5 = vsel %vm981_vm3, %v2887_v4, 0.0 }
 0x451   : > { %1330 = vadd.xlane.f32.xlu0 %v1329_v5  ;;  %v1994_v5 = vld [vmem:[%s3281_s24 + $0x18] sm:$0xff] }
 0x453   : > { %v2889_v6 = vpop.eup %2888 }
 0x454   : > { %v1332_v7 = vsel %vm981_vm3, %v2889_v6, 0.0 }
 0x455   : > { %1333 = vadd.xlane.f32.xlu1 %v1332_v7  ;;  %v2209_v1 = vld [vmem:[%s3682_s26] sm:$0x1] (!%p2590_p1) }
 0x458   : > { %v2891_v8 = vpop.eup %2890 }
 0x459   : > { %v1338_v9 = vsel %vm981_vm3, %v2891_v8, 0.0  ;;  %v2893_v13 = vpop.eup %2892 }
 0x45a   : > { %1339 = vadd.xlane.f32.xlu1 %v1338_v9  ;;  %v1335_v14 = vsel %vm981_vm3, %v2893_v13, 0.0 }
 0x467   : > { %1354 = vrot.lane.b32.xlu0 %v3344_v29, %s3049_s23 }
 0x46b   : > { %1660 = vrot.lane.b32.xlu1 %v3344_v29, %s3050_s25 }
 0x486   : > { %1336 = vadd.xlane.f32.xlu0 %v1335_v14 }
 0x49c   : > { %1810 = vrot.lane.b32.xlu0 %v3344_v29, %s3051_s18 }
 0x4de   : > { %v1331_v16 = vpop.xlane.xlu0 %1330 }
 0x4df   : > { %2894 = vrcp.f32 %v1331_v16  ;;  %v2081_v16 = vld [vmem:[%s3295_s9 + $0x8] sm:$0xff] }
 0x4e2   : > { %v1334_v17 = vpop.xlane.xlu1 %1333  ;;  %v1355_v18 = vpop.permute.xlu0 %1354 }
 0x4e3   : > { %2896 = vrcp.f32 %v1334_v17  ;;  %2681 = vmatpush3.msra.mxu0 %v1355_v18  ;;  %v2082_v18 = vld [vmem:[%s3295_s9 + $0x10] sm:$0xff] }
 0x4e4   : > { %2690 = vmatprep.subr.mxu0 %v3040_v24 }
 0x4e7   : > { %v1340_v22 = vpop.xlane.xlu1 %1339 }
 0x4e9   : > { %v2895_v19 = vpop.eup %2894 }
 0x4ea   : > { %v1345_v20 = vmul.f32 %v2895_v19, %v2887_v4  ;;  %v1993_v4 = vld [vmem:[%s3281_s24 + $0x10] sm:$0xff]  ;;  %v2083_v19 = vld [vmem:[%s3295_s9 + $0x18] sm:$0xff] }
 0x4eb   : > { %v1661_v27 = vpop.permute.xlu1 %1660 }
 0x4ec   : > { %2683 = vmatmul.mubr.msk.f32.vlgmr.msra.gmra.mrb[6].mxu0 %vm981_vm3, %v1345_v20  ;;  %v2777_v20 = vpack.c.bf16 %v2083_v19, %v2082_v18 }
 0x4ed   : > { %v2897_v23 = vpop.eup %2896  ;;  %2691 = vmatpush3.msra.mxu0 %v1511_v15  ;;  %2692 = vmatprep.mubr.msk.f32.mxu0 %vm3039_vm1, %v3040_v24  ;;  %v2080_v15 = vld [vmem:[%s3295_s9] sm:$0xff] }
 0x4ee   : > { %v1346_v25 = vmul.f32 %v2897_v23, %v2889_v6  ;;  %2700 = vmatprep.subr.mxu0 %v3040_v24  ;;  %v2774_v17 = vpack.c.bf16 %v2081_v16, %v2080_v15  ;;  %v2085_v23 = vld [vmem:[%s3295_s9 + $0x28] sm:$0xff] }
 0x4f0   : > { %2693 = vmatmul.mubr.msk.f32.vlgmr.msra.gmra.mrb[8].mxu0 %vm981_vm3, %v1346_v25 }
 0x4f1   : > { %2701 = vmatpush3.msra.mxu0 %v1661_v27  ;;  %2702 = vmatprep.mubr.msk.f32.mxu0 %vm3039_vm1, %v3040_v24  ;;  %v2086_v27 = vld [vmem:[%s3295_s9 + $0x30] sm:$0xff] }
 0x4f2   : > { %2710 = vmatprep.subr.mxu0 %v3040_v24 }
 0x513   : > { %v1337_v28 = vpop.xlane.xlu0 %1336 }
 0x514   : > { %2898 = vrcp.f32 %v1337_v28  ;;  %v2087_v28 = vld [vmem:[%s3295_s9 + $0x38] sm:$0xff] }
 0x515   : > { %2900 = vrcp.f32 %v1340_v22  ;;  %v2084_v22 = vld [vmem:[%s3295_s9 + $0x20] sm:$0xff] }
 0x516   : > { %v2780_v25 = vpack.c.bf16 %v2085_v23, %v2084_v22 }
 0x517   : > { %v1811_v32 = vpop.permute.xlu0 %1810 }
 0x51e   : > { %v2899_v29 = vpop.eup %2898 }
 0x51f   : > { %v1347_v30 = vmul.f32 %v2899_v29, %v2893_v13  ;;  %v2901_v31 = vpop.eup %2900  ;;  %v2783_v29 = vpack.c.bf16 %v2087_v28, %v2086_v27 }
 0x520   : > { %v1348_v33 = vmul.f32 %v2901_v31, %v2891_v8 }
 0x521   : > { %2703 = vmatmul.mubr.msk.f32.vlgmr.msra.gmra.mrb[10].mxu0 %vm981_vm3, %v1347_v30  ;;  %v2584_v30 = vld [vmem:[%s3677_s16] ss:$0 sm:$0xff] }
 0x522   : > { %2711 = vmatpush3.msra.mxu0 %v1811_v32  ;;  %2712 = vmatprep.mubr.msk.f32.mxu0 %vm3039_vm1, %v3040_v24 }
 0x523   : > { %2767 = vmatprep.subr.bf16.mxu0 %v3038_v21 }
 0x525   : > { %2713 = vmatmul.mubr.msk.f32.vlgmr.msra.gmra.mrb[12].mxu0 %vm981_vm3, %v1348_v33 }
 0x526   : > { %2728 = vmatprep.mubr.msk.f32.mxu0 %vm3039_vm1, %v3040_v24  ;;  %2769 = vmatpush3.bf16.msra.mxu0 %v2768_v3 }
 0x527   : > { %2770 = vmatprep.subr.bf16.mxu0 %v3038_v21 }
 0x5bf   : > { %v1426_v36 = vpop.f32.mrb[6].mxu0 }
 0x5c0   : > { %v2684_v37 = vpop.f32.mrb[7].mxu0  ;;  %2688 = vmatmul.mubr.msk.f32.vlgmr.msra.gmra.mrb[4].mxu1 %vm981_vm3, %v1426_v36 }
 0x5c1   : > { %2696 = vmatpush3.msra.mxu1 %v1350_v35  ;;  %2697 = vmatprep.mubr.msk.f32.mxu1 %vm3039_vm1, %v3040_v24 }
 0x5c2   : > { %2705 = vmatprep.subr.mxu1 %v3040_v24 }
 0x5c3   : > { %v1582_v39 = vpop.f32.mrb[8].mxu0 }
 0x5c4   : > { %v2694_v40 = vpop.f32.mrb[9].mxu0  ;;  %2698 = vmatmul.mubr.msk.f32.vlgmr.msra.gmra.mrb[6].mxu1 %vm981_vm3, %v1582_v39 }
 0x5c5   : > { %2706 = vmatpush3.msra.mxu1 %v1351_v38  ;;  %2707 = vmatprep.mubr.msk.f32.mxu1 %vm3039_vm1, %v3040_v24  ;;  %v2586_v38 = vld [vmem:[%s846_s22] ss:$0 sm:$0xff] }
 0x5c6   : > { %2715 = vmatprep.subr.mxu1 %v3040_v24 }
 0x5f4   : > { %v1732_v42 = vpop.f32.mrb[10].mxu0 }
 0x5f5   : > { %v2704_v43 = vpop.f32.mrb[11].mxu0  ;;  %2708 = vmatmul.mubr.msk.f32.vlgmr.msra.gmra.mrb[8].mxu1 %vm981_vm3, %v1732_v42 }
 0x5f6   : > { %2716 = vmatpush3.msra.mxu1 %v1352_v41  ;;  %2717 = vmatprep.mubr.msk.f32.mxu1 %vm3039_vm1, %v3040_v24 }
 0x5f7   : > { %2773 = vmatprep.subr.bf16.mxu1 %v3038_v21 }
 0x5f8   : > { %v1882_v44 = vpop.f32.mrb[12].mxu0 }
 0x5f9   : > { %v2714_v45 = vpop.f32.mrb[13].mxu0  ;;  %2718 = vmatmul.mubr.msk.f32.vlgmr.msra.gmra.mrb[10].mxu1 %vm981_vm3, %v1882_v44 }
 0x5fa   : > { %2747 = vmatprep.mubr.msk.f32.mxu1 %vm3039_vm1, %v3040_v24  ;;  %2775 = vmatpush3.bf16.msra.mxu1 %v2774_v17 }
 0x5fb   : > { %2776 = vmatprep.subr.bf16.mxu1 %v3038_v21 }
 0x5fe   : > { %2778 = vmatpush3.bf16.msra.mxu1 %v2777_v20 }
 0x5ff   : > { %2779 = vmatprep.subr.bf16.mxu1 %v3038_v21 }
 0x602   : > { %2781 = vmatpush3.bf16.msra.mxu1 %v2780_v25 }
 0x603   : > { %2782 = vmatprep.subr.bf16.mxu1 %v3038_v21 }
 0x606   : > { %2784 = vmatpush3.bf16.msra.mxu1 %v2783_v29 }
 0x693   : > { %v1499_v47 = vpop.f32.mrb[4].mxu1 }
 0x694   : > { %v2689_v48 = vpop.f32.mrb[5].mxu1  ;;  %v1509_v49 = vadd.f32 %v2575_v46, %v1499_v47 }
 0x697   : > { %v1655_v50 = vpop.f32.mrb[6].mxu1 }
 0x698   : > { %v1659_v51 = vadd.f32 %v1655_v50, %v1509_v49  ;;  %v2699_v52 = vpop.f32.mrb[7].mxu1 }
 0x6c8   : > { %v1805_v53 = vpop.f32.mrb[8].mxu1 }
 0x6c9   : > { %v1809_v54 = vadd.f32 %v1805_v53, %v1659_v51  ;;  %v2709_v55 = vpop.f32.mrb[9].mxu1  ;;  %v2588_v53 = vld [vmem:[%s849_s5] ss:$0 sm:$0xff] }
 0x6ca   : > { %v2589_v55 = vld [vmem:[%s852_s10] ss:$0 sm:$0xff] }
 0x6cc   : > { %v1955_v56 = vpop.f32.mrb[10].mxu1 }
 0x6cd   : > { %v1959_v57 = vadd.f32 %v1955_v56, %v1809_v54  ;;  %v2719_v24 = vpop.f32.mrb[11].mxu1 }
 0x6ce   : > { %v2205_v24 = vld [vmem:[%s3681_s30] sm:$0xff] (!%p2590_p1) }
 0x6cf   : > { %v1960_v58 = vadd.f32 %v1959_v57, %v3332_v26  ;;  %v2771_v26 = vpack.c.bf16 %v1994_v5, %v1993_v4 }
 0x6d1   : > { %v1963_v59 = vsel %vm904_vm2, %v1960_v58, 0.0  ;;  %2772 = vmatpush3.bf16.msra.mxu0 %v2771_v26 }
 0x6d2   : > { %1964 = vadd.xlane.f32.xlu1 %v1963_v59  ;;  %v2207_v59 = vld [vmem:[%s3681_s30 + $0x10] sm:$0xff] (!%p2590_p1) }
 0x75f   : > { %v1965_v60 = vpop.xlane.xlu1 %1964 }
 0x760   : > { %v1967_v61 = vmul.f32 0.03125, %v1965_v60  ;;  %v3052_v60 = vmov (!%p2590_p1), 0.0|0.0  }
 0x761   : > { %2785 = vmatprep.subr.bf16.mxu0 (!%p2590_p1), %v3052_v60 }
 0x762   : > { %v1968_v62 = vsub.f32 %v1960_v58, %v1967_v61  ;;  %v2206_v58 = vld [vmem:[%s3681_s30 + $0x8] sm:$0xff] (!%p2590_p1) }
 0x763   : > { %v2786_v61 = vpack.c.bf16 (!%p2590_p1), %v2206_v58, %v2205_v24 }
 0x764   : > { %v1969_v63 = vmul.f32 %v1968_v62, %v1968_v62 }
 0x766   : > { %v1970_v0 = vsel %vm904_vm2, %v1969_v63, 0.0  ;;  %v3054_v63 = vmov (!%p2590_p1), 0.0  }
 0x767   : > { %1971 = vadd.xlane.f32.xlu0 %v1970_v0 }
 0x7f4   : > { %v1972_v6 = vpop.xlane.xlu0 %1971 }
 0x7f5   : > { %v1973_v7 = vmul.f32 0.03125, %v1972_v6 }
 0x7f7   : > { %v1974_v8 = vadd.f32 1e-12, %v1973_v7 }
 0x7f9   : > { %2902 = vrsqrt.f32 %v1974_v8 }
 0x803   : > { %v2903_v9 = vpop.eup %2902 }
 0x804   : > { %v1976_v11 = vmul.f32 %v2903_v9, %v1968_v62  ;;  %v2208_v62 = vld [vmem:[%s3681_s30 + $0x18] sm:$0xff] (!%p2590_p1) }
 0x805   : > { %v2789_v0 = vpack.c.bf16 (!%p2590_p1), %v2208_v62, %v2207_v59 }
 0x806   : > { %v1983_v13 = vmul.f32 %v2582_v10, %v1976_v11 }
 0x808   : > { %v1990_v14 = vadd.f32 %v2583_v12, %v1983_v13 }
 0x80a   : > { %2729 = vmatmul.mubr.msk.f32.vlgmr.msra.gmra.mrb[14].mxu0 %vm904_vm2, %v1990_v14 }
 0x80b   : > { %2758 = vmatprep.mubr.msk.f32.mxu0 (!%p2590_p1), %vm3053_vm5, %v3054_v63  ;;  %2787 = vmatpush3.bf16.msra.mxu0 (!%p2590_p1), %v2786_v61 }
 0x80c   : > { %2788 = vmatprep.subr.bf16.mxu0 (!%p2590_p1), %v3052_v60 }
 0x80f   : > { %2790 = vmatpush3.bf16.msra.mxu0 (!%p2590_p1), %v2789_v0 }
 0x8dd   : > { %v2071_v31 = vpop.f32.mrb[14].mxu0 }
 0x8de   : > { %v2072_v32 = vadd.f32 %v2584_v30, %v2071_v31  ;;  %v2730_v33 = vpop.f32.mrb[15].mxu0 }
 0x8e0   : > { %v2076_v34 = vmul.f32 0.70710677, %v2072_v32  ;;  %v2075_v36 = vmul.f32 0.5, %v2072_v32 }
 0x8e2   : > { %2904 = verf.f32 %v2076_v34 }
 0x8ec   : > { %v2905_v35 = vpop.eup %2904 }
 0x8ed   : > { %v2078_v37 = vadd.f32 1.0, %v2905_v35 }
 0x8ef   : > { %v2079_v21 = vmul.f32 %v2078_v37, %v2075_v36 }
 0x8f1   : > { %2748 = vmatmul.mubr.msk.f32.vlgmr.msra.gmra.mrb[12].mxu1 %vm2095_vm4, %v2079_v21 }
 0x9c4   : > { %v2165_v39 = vpop.f32.mrb[12].mxu1 }
 0x9c5   : > { %v2166_v40 = vadd.f32 %v2586_v38, %v2165_v39  ;;  %v2749_v41 = vpop.f32.mrb[13].mxu1 }
 0x9c7   : > { %v2169_v42 = vadd.f32 %v2166_v40, %v1990_v14 }
 0x9c9   : > { %v2172_v43 = vsel %vm904_vm2, %v2169_v42, 0.0 }
 0x9ca   : > { %2173 = vadd.xlane.f32.xlu0 %v2172_v43 }
 0xa57   : > { %v2174_v44 = vpop.xlane.xlu0 %2173 }
 0xa58   : > { %v2175_v45 = vmul.f32 0.03125, %v2174_v44 }
 0xa5a   : > { %v2176_v46 = vsub.f32 %v2169_v42, %v2175_v45 }
 0xa5c   : > { %v2177_v47 = vmul.f32 %v2176_v46, %v2176_v46 }
 0xa5e   : > { %v2178_v48 = vsel %vm904_vm2, %v2177_v47, 0.0 }
 0xa5f   : > { %2179 = vadd.xlane.f32.xlu1 %v2178_v48 }
 0xaec   : > { %v2180_v49 = vpop.xlane.xlu1 %2179 }
 0xaed   : > { %v2181_v50 = vmul.f32 0.03125, %v2180_v49 }
 0xaef   : > { %v2182_v51 = vadd.f32 1e-12, %v2181_v50 }
 0xaf1   : > { %2906 = vrsqrt.f32 %v2182_v51 }
 0xafb   : > { %v2907_v52 = vpop.eup %2906 }
 0xafc   : > { %v2184_v54 = vmul.f32 %v2907_v52, %v2176_v46  ;;  %2203 = sbr.rel (%p2590_p1) target bundleno = 3044 (0xbe4), region = 104 }
 0xafe   : > { %v2191_v56 = vmul.f32 %v2588_v53, %v2184_v54 }
 0xb00   : > { %v2198_v57 = vadd.f32 %v2589_v55, %v2191_v56 }
 0xb02   : > { %2199 = vst.msk [vmem:[#allocation2] sm:$0xff] %vm904_vm2, %v2198_v57  ;;  %2204 = vst.msk [vmem:[%s3305_s13] sm:$0xff] (!%p2590_p1), %vm904_vm2, %v2198_v57  ;;  %2759 = vmatmul.mubr.msk.f32.vlgmr.msra.gmra.mrb[0].mxu0 (!%p2590_p1), %vm904_vm2, %v2198_v57 }
 0xbd5   : > { %v2279_v2 = vpop.f32.mrb[0].mxu0 }
 0xbd6   : > { %v2280_v3 = vadd.f32 %v2279_v2, %v2209_v1  ;;  %v2760_v4 = vpop.f32.mrb[1].mxu0 }
 0xbd8   : > { %2908 = vtanh.f32 %v2280_v3 }
 0xbe2   : > { %v2909_v5 = vpop.eup %2908 }
 0xbe3   : > { %2285 = vst.msk [vmem:[%s801_s15] sm:$0x1] %vm2284_vm6, %v2909_v5 }
 0xbe4 PF: > { %s3683_s7 = sld [smem:[#allocation13_spill]]  ;;  %s3685_s22 = sld [smem:[#allocation37_spill]] }
 0xbe5   : > { %s2304_s23 = sshll.u32 %s3305_s13, 4  ;;  %s2287_s25 = scalar_lea.sflag [#allocation4], %s3232_s28  ;;  %s2305_s23 = int_to_ptr.vmem [resolvable:$true] %s2304_s23 }
 0xbe6   : > { %s2910_s21 = scalar_lea.vmem %s2305_s23, 128  ;;  %s3055_s0 = smov [#allocation3]  }
 0xbe7   : > { %p2911_p2 = scmp.ne.s32.totalorder %s2305_s23, %s2910_s21  ;;  %s2914_s3 = sshll.u32 %s3055_s0, 4  ;;  %s2915_s3 = int_to_ptr.vmem [resolvable:$false] %s2914_s3 }
 0xbe8   : > { %s2916_s2 = scalar_lea.vmem %s2915_s3, 256  ;;  %p2917_p6 = scmp.lt.s32.totalorder %s2305_s23, %s2915_s3 }
 0xbe9   : > { %p2912_p4 = pnand %p2911_p2, %p3211_p3  ;;  %p2918_p7 = scmp.lt.s32.totalorder %s2916_s2, %s2910_s21 }
 0xbea   : > { %s2593_s16 = sshll.u32 %s3683_s7, 7  ;;  %s3686_s18 = smov %s3685_s22 }
 0xbeb   : > { %s3510_s1 = scalar_lea.hbm %s3685_s22, %s2593_s16  ;;  %p2913_p5 = pneg %p2912_p4 }
 0xbec   : > { %p2919_p8 = por %p2918_p7, %p2917_p6 }
 0xbee   : > { %p2920_p10 = pnand %p2919_p8, %p2913_p5 }
 0xbf0   : > { %2923 = shalt.err (!%p2920_p10)
}
 0xbf1   : > { %s2924_s13 = scalar_lea.hbm %s3510_s1, 128  ;;  %s2928_s29 = scalar_lea.hbm %s3686_s18, 256 }
 0xbf2   : > { %p2925_p11 = scmp.ne.s32.totalorder %s3510_s1, %s2924_s13  ;;  %p2929_p0 = scmp.lt.u32.totalorder %s3510_s1, %s3686_s18 }
 0xbf3   : > { %p2930_p1 = scmp.lt.u32.totalorder %s2928_s29, %s2924_s13  ;;  %p2932_p4 = scmp.lt.u32.totalorder %s2924_s13, %s3510_s1 }
 0xbf4   : > { %p2926_p12 = pnand %p2925_p11, %p3211_p3 }
 0xbf5   : > { %p2931_p2 = por %p2930_p1, %p2929_p0 }
 0xbf6   : > { %p2927_p13 = pneg %p2926_p12 }
 0xbf7   : > { %p2933_p5 = por %p2932_p4, %p2931_p2 }
 0xbf9   : > { %p2934_p6 = pnand %p2933_p5, %p2927_p13 }
 0xbfb   : > { %2937 = shalt.err (!%p2934_p6)
}
 0xbfc   : > { %2791 = dma.vmem_to_hbm [thread:$0]  (%p3211_p3), %s2305_s23, 128, %s3510_s1, %s2287_s25  }
 0xbfd   : > { %s2594_s24 = sshll.u32 %s3683_s7, 4  ;;  %s2317_s4 = sshll.u32 %s801_s15, 4  ;;  %s2318_s4 = int_to_ptr.vmem [resolvable:$true] %s2317_s4 }
 0xbfe   : > { %s3687_s16 = sld [smem:[#allocation38_spill]]  ;;  %s2292_s9 = scalar_lea.sflag [#allocation6], %s3232_s28 }
 0xbff   : > { %s2938_s22 = scalar_lea.vmem %s2318_s4, 16  ;;  %s3056_s21 = smov [#allocation5]  }
 0xc00   : > { %p2939_p7 = scmp.ne.s32.totalorder %s2318_s4, %s2938_s22  ;;  %s2942_s0 = sshll.u32 %s3056_s21, 4  ;;  %s2943_s0 = int_to_ptr.vmem [resolvable:$false] %s2942_s0 }
 0xc01   : > { %s2944_s3 = scalar_lea.vmem %s2943_s0, 32  ;;  %p2945_p11 = scmp.lt.s32.totalorder %s2318_s4, %s2943_s0 }
 0xc02   : > { %p2940_p8 = pnand %p2939_p7, %p3211_p3  ;;  %p2946_p12 = scmp.lt.s32.totalorder %s2944_s3, %s2938_s22 }
 0xc04   : > { %s3537_s20 = scalar_lea.hbm %s3687_s16, %s2594_s24  ;;  %p2941_p10 = pneg %p2940_p8 }
 0xc05   : > { %p2947_p13 = por %p2946_p12, %p2945_p11 }
 0xc07   : > { %p2948_p0 = pnand %p2947_p13, %p2941_p10 }
 0xc09   : > { %2951 = shalt.err (!%p2948_p0)
}
 0xc0a   : > { %s2952_s28 = scalar_lea.hbm %s3537_s20, 16  ;;  %s2956_s1 = scalar_lea.hbm %s3687_s16, 32 }
 0xc0b   : > { %p2953_p1 = scmp.ne.s32.totalorder %s3537_s20, %s2952_s28  ;;  %p2957_p5 = scmp.lt.u32.totalorder %s3537_s20, %s3687_s16 }
 0xc0c   : > { %p2958_p6 = scmp.lt.u32.totalorder %s2956_s1, %s2952_s28  ;;  %p2960_p8 = scmp.lt.u32.totalorder %s2952_s28, %s3537_s20 }
 0xc0d   : > { %p2954_p2 = pnand %p2953_p1, %p3211_p3 }
 0xc0e   : > { %p2959_p7 = por %p2958_p6, %p2957_p5 }
 0xc0f   : > { %p2955_p4 = pneg %p2954_p2 }
 0xc10   : > { %p2961_p10 = por %p2960_p8, %p2959_p7 }
 0xc12   : > { %p2962_p11 = pnand %p2961_p10, %p2955_p4 }
 0xc14   : > { %2965 = shalt.err (!%p2962_p11)
}
 0xc15   : > { %2792 = dma.vmem_to_hbm [thread:$0]  (%p3211_p3), %s2318_s4, 16, %s3537_s20, %s2292_s9  }
 0xc16 PF: > { %s3688_s2 = sld [smem:[#allocation16_spill]]  ;;  %s3689_s13 = sld [smem:[#allocation9_spill]] }
 0xc1c   : > { %p2802_p12 = scmp.ge.s32.totalorder %s3688_s2, 2  ;;  %s2329_s19 = sand.u32 1, %s3689_s13  }
 0xc1d   : > { %s2330_s29 = scalar_lea.sflag [#allocation4], %s2329_s19 }
 0xc1e   : > { %p2796_p13 = pnand %p2802_p12, %p3221_p9 }
 0xc20   : > { %2999 = dma.done.wait (!%p2796_p13), %s2330_s29, 128  }
 0xc21   : > { %3001 = vsyncadd (!%p2796_p13), %s2330_s29, 4294967168  ;;  %s2339_s10 = scalar_lea.sflag [#allocation6], %s2329_s19 }
 0xc22   : > { %3003 = dma.done.wait (!%p2796_p13), %s2339_s10, 16  }
 0xc23   : > { %3005 = vsyncadd (!%p2796_p13), %s2339_s10, 4294967280  ;;  %s37_s26 = sadd.s32 1, %s3688_s2   ;;  %s3691_s1 = sld [smem:[#allocation10_spill]] }
 0xc24   : > { %p34_p0 = scmp.ge.s32.totalorder %s37_s26, 6   ;;  %s3692_s22 = sld [smem:[#allocation11_spill]] }
 0xc25   : > { %s3693_s23 = sld [smem:[#allocation21_spill]]  ;;  %s3694_s24 = sld [smem:[#allocation14_spill]] }
 0xc26   : > { %s3695_s2 = sld [smem:[#allocation15_spill]]  ;;  %s3696_s25 = sld [smem:[#allocation17_spill]] }
 0xc27   : > { %s3697_s3 = sld [smem:[#allocation19_spill]]  ;;  %36 = sbr.rel (!%p34_p0) target bundleno = 25 (0x19), region = 195 }
 0xc2e   :  { %2343 = vsyncpa [#allocation4], 1 }
 0xc2f   :  { %2345 = vsyncpa [#allocation4 + $0x1], 1 }
 0xc30   :  { %2346 = vsyncpa [#allocation6], 1 }
 0xc31   :  { %2348 = vsyncpa [#allocation6 + $0x1], 1 }

</bundles_post_ra>
